<compile_context>
chip_gen: v5e
topology: v5e:2x2
jax: 0.10.0
libtpu: 0.0.40
codegen_flags: <defaults>
</compile_context>

<pallas_src>
import jax
import jax.numpy as jnp
from jax.experimental import pallas as pl
from jax.experimental.pallas import tpu as pltpu


# ----------------------------- Fused Pallas kernel -------------------------- #

def make_fused_kernel(num_layers):
    """embed MLP -> num_layers x (PointTransformerConv + BN + ReLU) -> decoder.

    One grid step == one batch sample; all intermediates live in VMEM/vregs.
    Ref order: feat, mask, [we1,be1,we2,be2], 6*num_layers layer refs,
               [wd1,bd1,wd2,bd2], out.
    """

    def kernel(*refs):
        feat_ref, mask_ref = refs[0], refs[1]
        we1, be1, we2, be2 = refs[2:6]
        lrefs = refs[6:6 + 6 * num_layers]
        wd1, bd1, wd2, bd2 = refs[6 + 6 * num_layers:10 + 6 * num_layers]
        o_ref = refs[10 + 6 * num_layers]

        f32, bf16 = jnp.float32, jnp.bfloat16

        feat = feat_ref[0].astype(bf16)          # (N, 8) xyzrgb + zero pad
        m = mask_ref[0]                          # (N, N) kNN + self loops (bf16)

        # ---- mlp_embed + bn_embed (eval BN folded into linears) + ReLU ----
        h = jnp.dot(feat, we1[...], preferred_element_type=f32) + be1[...]
        h = jnp.maximum(h, 0.0)
        h = jnp.dot(h.astype(bf16), we2[...], preferred_element_type=f32) + be2[...]
        x = jnp.maximum(h, 0.0)                  # (N, E) f32

        # ---- PointTransformerConv + BatchNorm(eval) + ReLU per layer ----
        for l in range(num_layers):
            wsrc, wlin, wpos, bpos, scale, shift = lrefs[6 * l:6 * l + 6]
            xb = x.astype(bf16)
            # W_pos rows >= 3 are zero, so feat @ wpos == pos @ W_pos.
            posw = jnp.dot(feat, wpos[...], preferred_element_type=f32)    # (N, H)
            xs = jnp.dot(xb, wsrc[...], preferred_element_type=f32)        # lin_src(x)
            # query-side softmax terms cancel; logits depend only on source j
            b = xs + posw                                                  # (N, H)
            # TODO(synk): global per-channel stabilizer; with trained weights a
            # per-row masked stabilizer would be more underflow-robust.
            bmin = jnp.min(b, axis=0, keepdims=True)
            eb = jnp.exp(bmin - b)                                         # (0, 1]
            den = jnp.dot(m, eb.astype(bf16), preferred_element_type=f32)  # (N, H)
            xv = jnp.dot(xb, wlin[...], preferred_element_type=f32)        # lin(x)
            ebw = (eb * (xv - posw)).astype(bf16)                          # short live range
            num = jnp.dot(m, ebw, preferred_element_type=f32)              # (N, H)
            inv = pl.reciprocal(jnp.maximum(den, 1e-30), approx=True)      # EUP slot
            out = num * inv + posw + bpos[...]
            x = jnp.maximum(out * scale[...] + shift[...], 0.0)            # BN + ReLU

        # ---- decoder: Linear -> BN -> ReLU -> Dropout(eval) -> Linear ----
        # TODO(synk): Dropout is identity in eval mode.
        h = jnp.dot(x.astype(bf16), wd1[...], preferred_element_type=f32) + bd1[...]
        h = jnp.maximum(h, 0.0)
        logits = jnp.dot(h.astype(bf16), wd2[...], preferred_element_type=f32) + bd2[...]
        o_ref[0] = logits.astype(o_ref.dtype)    # lane-dense (N, 128) store

    return kernel


# ------------------------------- Wrapper ------------------------------------ #

def _const_spec(arr):
    nd = arr.ndim
    return pl.BlockSpec(arr.shape, lambda b: (0,) * nd)


def _fold_linear_bn(w, b, s, t):
    # (x @ w + b) * s + t  ==  x @ (w * s) + (b * s + t)
    return w * s, b * s + t


def prepare_kernel_params(params, num_classes):
    """Fold eval-BN into the MLP linears, pad decoder output to 128 lanes and
    cast all MXU weight operands to bf16 (biases/scale/shift stay f32)."""
    bf16 = jnp.bfloat16
    pe = params["embed"]
    we1, be1 = _fold_linear_bn(pe["W1"], pe["b1"], pe["s1"], pe["t1"])
    we2, be2 = _fold_linear_bn(pe["W2"], pe["b2"], pe["s2"], pe["t2"])

    layer_args = []
    for lp in params["layers"]:
        layer_args += [lp["Wsrc"].astype(bf16), lp["Wlin"].astype(bf16),
                       lp["Wpos"].astype(bf16), lp["bpos"],
                       lp["scale"], lp["shift"]]

    pd = params["decoder"]
    wd1, bd1 = _fold_linear_bn(pd["W1"], pd["b1"], pd["s"], pd["t"])
    ncls_pad = max(128, ((num_classes + 127) // 128) * 128)
    wd2 = jnp.pad(pd["W2"], ((0, 0), (0, ncls_pad - num_classes)))
    bd2 = jnp.pad(pd["b2"], ((0, 0), (0, ncls_pad - num_classes)))

    args = ([we1.astype(bf16), be1, we2.astype(bf16), be2]
            + layer_args
            + [wd1.astype(bf16), bd1, wd2.astype(bf16), bd2])
    return args, ncls_pad


def knn_adjacency(pos, k):
    """Dense per-sample kNN adjacency (loop=False) + self loops, float32.

    adj[b, i, j] = 1 iff j is among the k nearest neighbors of i (j != i)
    within sample b, or j == i (PointTransformerConv's add_self_loops).
    Distances via |pi|^2 + |pj|^2 - 2<pi,pj> (MXU-friendly, no (B,N,N,3)
    broadcast); membership via the per-row k-th-distance threshold (no
    (B,N,k,N) one-hot).
    """
    b_, n, _ = pos.shape
    sq = jnp.sum(pos * pos, axis=-1)                               # (B, N)
    d = (sq[:, :, None] + sq[:, None, :]
         - 2.0 * jnp.einsum('bnd,bmd->bnm', pos, pos))             # (B, N, N)
    eye = jnp.eye(n, dtype=bool)[None]
    d = jnp.where(eye, jnp.inf, d)                                 # loop=False
    neg_kth = jax.lax.top_k(-d, k)[0][..., k - 1:k]                # (B, N, 1)
    adj = (d <= -neg_kth).astype(jnp.float32)                      # k nearest per row
    return jnp.maximum(adj, eye.astype(jnp.float32))               # + self loops


def forward_pallas(params, features, k):
    b_, n, c = features.shape
    assert c == 6, "Input features should have 6 channels (XYZRGB)"
    num_layers = len(params["layers"])
    num_classes = params["decoder"]["W2"].shape[1]

    pos = features[..., :3]
    mask = knn_adjacency(pos, k).astype(jnp.bfloat16)              # (B, N, N)
    feat = jnp.pad(features, ((0, 0), (0, 0), (0, 2)))             # (B, N, 8)

    weight_args, ncls_pad = prepare_kernel_params(params, num_classes)

    in_specs = ([pl.BlockSpec((1, n, 8), lambda b: (b, 0, 0)),
                 # TODO(synk): dense (N, N) mask — row-tile the query axis and
                 # set vmem_limit_bytes before scaling N (hits v7x 64 MiB first).
                 pl.BlockSpec((1, n, n), lambda b: (b, 0, 0))]
                + [_const_spec(a) for a in weight_args])

    logits_pad = pl.pallas_call(
        make_fused_kernel(num_layers),
        out_shape=jax.ShapeDtypeStruct((b_, n, ncls_pad), jnp.float32),
        grid=(b_,),
        in_specs=in_specs,
        out_specs=pl.BlockSpec((1, n, ncls_pad), lambda b: (b, 0, 0)),
        compiler_params=pltpu.CompilerParams(
            dimension_semantics=("parallel",)),    # batch shards across TCs (v7x)
    )(feat, mask, *weight_args)
    return logits_pad[..., :num_classes]


# --------------------------- Pure-JAX reference ------------------------------ #

def forward_ref(params, features, k):
    """Literal (non-simplified) PyG PointTransformerConv forward, eval, f32."""
    b_, n, _ = features.shape
    pos = features[..., :3]
    mask = knn_adjacency(pos, k)
    m4 = (mask > 0.0)[..., None]

    pe = params["embed"]
    x = jnp.pad(features.reshape(b_ * n, 6), ((0, 0), (0, 2)))
    h = x @ pe["W1"] + pe["b1"]
    h = jnp.maximum(h * pe["s1"] + pe["t1"], 0.0)
    h = h @ pe["W2"] + pe["b2"]
    x = jnp.maximum(h * pe["s2"] + pe["t2"], 0.0)
    x = x.reshape(b_, n, -1)

    pos_pad = jnp.pad(pos, ((0, 0), (0, 0), (0, 5)))
    for lp in params["layers"]:
        xs = x @ lp["Wsrc"]          # lin_src
        xd = x @ lp["Wdst"]          # lin_dst (provably cancels; kept for fidelity)
        xv = x @ lp["Wlin"]          # lin
        posw = pos_pad @ lp["Wpos"]
        delta = posw[:, :, None, :] - posw[:, None, :, :] + lp["bpos"]   # (B,N,N,C)
        gamma = xd[:, :, None, :] - xs[:, None, :, :] + delta
        gamma = jnp.where(m4, gamma, -jnp.inf)
        gamma = gamma - jnp.max(gamma, axis=2, keepdims=True)
        e = jnp.where(m4, jnp.exp(gamma), 0.0)
        alpha = e / jnp.sum(e, axis=2, keepdims=True)
        out = jnp.sum(alpha * (xv[:, None, :, :] + delta), axis=2)
        x = jnp.maximum(out * lp["scale"] + lp["shift"], 0.0)

    pd = params["decoder"]
    xf = x.reshape(b_ * n, -1)
    h = xf @ pd["W1"] + pd["b1"]
    h = jnp.maximum(h * pd["s"] + pd["t"], 0.0)
    logits = h @ pd["W2"] + pd["b2"]
    return logits.reshape(b_, n, -1)


# ------------------------------- Parameters ---------------------------------- #

def init_params(key, *, num_classes, embed_dim, hidden, num_layers):
    def linear(kk, fin, fout, bias=True, pad_to=None):
        kw, kb = jax.random.split(kk)
        bound = 1.0 / float(fin) ** 0.5                 # PyTorch Linear default init
        w = jax.random.uniform(kw, (fin, fout), jnp.float32, -bound, bound)
        if pad_to is not None and pad_to > fin:
            w = jnp.pad(w, ((0, pad_to - fin), (0, 0)))  # zero rows for padded inputs
        b = (jax.random.uniform(kb, (1, fout), jnp.float32, -bound, bound)
             if bias else None)
        return w, b

    def bn(c, eps=1e-5):
        # PyTorch BatchNorm1d defaults (eval): weight=1, bias=0, mean=0, var=1
        scale = jnp.full((1, c), 1.0 / (1.0 + eps) ** 0.5, jnp.float32)
        shift = jnp.zeros((1, c), jnp.float32)
        return scale, shift

    keys = iter(jax.random.split(key, 64))

    w1, b1 = linear(next(keys), 6, embed_dim, pad_to=8)
    s1, t1 = bn(embed_dim)
    w2, b2 = linear(next(keys), embed_dim, embed_dim)
    s2, t2 = bn(embed_dim)                               # bn_embed
    embed = dict(W1=w1, b1=b1, s1=s1, t1=t1, W2=w2, b2=b2, s2=s2, t2=t2)

    layers = []
    cin = embed_dim
    for _ in range(num_layers):
        wsrc, _ = linear(next(keys), cin, hidden, bias=False)
        wdst, _ = linear(next(keys), cin, hidden, bias=False)   # used by reference only
        wlin, _ = linear(next(keys), cin, hidden, bias=False)
        wpos, bpos = linear(next(keys), 3, hidden, pad_to=8)
        scale, shift = bn(hidden)
        layers.append(dict(Wsrc=wsrc, Wdst=wdst, Wlin=wlin, Wpos=wpos, bpos=bpos,
                           scale=scale, shift=shift))
        cin = hidden

    wd1, bd1 = linear(next(keys), hidden, hidden)
    sd, td = bn(hidden)
    wd2, bd2 = linear(next(keys), hidden, num_classes)
    decoder = dict(W1=wd1, b1=bd1, s=sd, t=td, W2=wd2, b2=bd2)

    return dict(embed=embed, layers=layers, decoder=decoder)


# ---------------------------------- Main -------------------------------------- #

if __name__ == "__main__":
    B, N = 2, 64                    # small point clouds
    K_NEIGHBORS = 16                # args.k_neighbors default
    EMBED_DIM, HIDDEN = 64, 128     # embed_dim / pt_hidden_dim defaults
    NUM_LAYERS = 2                  # num_transformer_layers default
    NUM_CLASSES = 13
    # pt_heads (=4) and dropout (=0.3) do not affect the eval-mode forward pass.

    key = jax.random.PRNGKey(0)
    kp, kx = jax.random.split(key)
    params = init_params(kp, num_classes=NUM_CLASSES, embed_dim=EMBED_DIM,
                         hidden=HIDDEN, num_layers=NUM_LAYERS)
    features = jax.random.uniform(kx, (B, N, 6), jnp.float32)   # XYZRGB in [0, 1)

    logits = forward_pallas(params, features, K_NEIGHBORS)
    logits = jax.block_until_ready(logits)

    ref = forward_ref(params, features, K_NEIGHBORS)
    assert logits.shape == (B, N, NUM_CLASSES)
    assert bool(jnp.all(jnp.isfinite(logits)))
    err = float(jnp.max(jnp.abs(logits - ref)))
    ref_scale = float(jnp.max(jnp.abs(ref)))
    # bf16 MXU operands (f32 accumulation) + approx reciprocal: tolerance is
    # widened vs the pure-f32 literal-PyG reference.
    tol = 5e-2 * max(1.0, ref_scale)
    assert err < tol, f"mismatch vs reference: max abs err = {err} (tol {tol})"

    print("KERNEL_OK")
</pallas_src>

<mosaic_0001>
module attributes {stable_mosaic.version = 11 : i64} {
  func.func @kernel(%arg0: i32, %arg1: memref<1x64x8xf32, #tpu.memory_space<vmem>>, %arg2: memref<1x64x64xbf16, #tpu.memory_space<vmem>>, %arg3: memref<8x64xbf16, #tpu.memory_space<vmem>>, %arg4: memref<1x64xf32, #tpu.memory_space<vmem>>, %arg5: memref<64x64xbf16, #tpu.memory_space<vmem>>, %arg6: memref<1x64xf32, #tpu.memory_space<vmem>>, %arg7: memref<64x128xbf16, #tpu.memory_space<vmem>>, %arg8: memref<64x128xbf16, #tpu.memory_space<vmem>>, %arg9: memref<8x128xbf16, #tpu.memory_space<vmem>>, %arg10: memref<1x128xf32, #tpu.memory_space<vmem>>, %arg11: memref<1x128xf32, #tpu.memory_space<vmem>>, %arg12: memref<1x128xf32, #tpu.memory_space<vmem>>, %arg13: memref<128x128xbf16, #tpu.memory_space<vmem>>, %arg14: memref<128x128xbf16, #tpu.memory_space<vmem>>, %arg15: memref<8x128xbf16, #tpu.memory_space<vmem>>, %arg16: memref<1x128xf32, #tpu.memory_space<vmem>>, %arg17: memref<1x128xf32, #tpu.memory_space<vmem>>, %arg18: memref<1x128xf32, #tpu.memory_space<vmem>>, %arg19: memref<128x128xbf16, #tpu.memory_space<vmem>>, %arg20: memref<1x128xf32, #tpu.memory_space<vmem>>, %arg21: memref<128x128xbf16, #tpu.memory_space<vmem>>, %arg22: memref<1x128xf32, #tpu.memory_space<vmem>>, %arg23: memref<1x64x128xf32, #tpu.memory_space<vmem>>) attributes {dimension_semantics = [#tpu.dimension_semantics<parallel>], iteration_bounds = array<i64: 2>, scalar_prefetch = 0 : i64, scratch_operands = 0 : i64, tpu.core_type = #tpu.core_type<tc>, window_params = [{transform_indices = @transform_0, window_bounds = array<i64: 1, 64, 8>}, {transform_indices = @transform_1, window_bounds = array<i64: 1, 64, 64>}, {pipeline_mode = #tpu.pipeline_mode<synchronous>, transform_indices = @transform_2, window_bounds = array<i64: 8, 64>}, {pipeline_mode = #tpu.pipeline_mode<synchronous>, transform_indices = @transform_3, window_bounds = array<i64: 1, 64>}, {pipeline_mode = #tpu.pipeline_mode<synchronous>, transform_indices = @transform_4, window_bounds = array<i64: 64, 64>}, {pipeline_mode = #tpu.pipeline_mode<synchronous>, transform_indices = @transform_5, window_bounds = array<i64: 1, 64>}, {pipeline_mode = #tpu.pipeline_mode<synchronous>, transform_indices = @transform_6, window_bounds = array<i64: 64, 128>}, {pipeline_mode = #tpu.pipeline_mode<synchronous>, transform_indices = @transform_7, window_bounds = array<i64: 64, 128>}, {pipeline_mode = #tpu.pipeline_mode<synchronous>, transform_indices = @transform_8, window_bounds = array<i64: 8, 128>}, {pipeline_mode = #tpu.pipeline_mode<synchronous>, transform_indices = @transform_9, window_bounds = array<i64: 1, 128>}, {pipeline_mode = #tpu.pipeline_mode<synchronous>, transform_indices = @transform_10, window_bounds = array<i64: 1, 128>}, {pipeline_mode = #tpu.pipeline_mode<synchronous>, transform_indices = @transform_11, window_bounds = array<i64: 1, 128>}, {pipeline_mode = #tpu.pipeline_mode<synchronous>, transform_indices = @transform_12, window_bounds = array<i64: 128, 128>}, {pipeline_mode = #tpu.pipeline_mode<synchronous>, transform_indices = @transform_13, window_bounds = array<i64: 128, 128>}, {pipeline_mode = #tpu.pipeline_mode<synchronous>, transform_indices = @transform_14, window_bounds = array<i64: 8, 128>}, {pipeline_mode = #tpu.pipeline_mode<synchronous>, transform_indices = @transform_15, window_bounds = array<i64: 1, 128>}, {pipeline_mode = #tpu.pipeline_mode<synchronous>, transform_indices = @transform_16, window_bounds = array<i64: 1, 128>}, {pipeline_mode = #tpu.pipeline_mode<synchronous>, transform_indices = @transform_17, window_bounds = array<i64: 1, 128>}, {pipeline_mode = #tpu.pipeline_mode<synchronous>, transform_indices = @transform_18, window_bounds = array<i64: 128, 128>}, {pipeline_mode = #tpu.pipeline_mode<synchronous>, transform_indices = @transform_19, window_bounds = array<i64: 1, 128>}, {pipeline_mode = #tpu.pipeline_mode<synchronous>, transform_indices = @transform_20, window_bounds = array<i64: 128, 128>}, {pipeline_mode = #tpu.pipeline_mode<synchronous>, transform_indices = @transform_21, window_bounds = array<i64: 1, 128>}, {transform_indices = @transform_22, window_bounds = array<i64: 1, 64, 128>}]} {
    %c0 = arith.constant 0 : index
    %c0_0 = arith.constant 0 : index
    %c0_1 = arith.constant 0 : index
    %0 = vector.load %arg1[%c0, %c0_0, %c0_1] : memref<1x64x8xf32, #tpu.memory_space<vmem>>, vector<1x64x8xf32>
    %1 = vector.shape_cast %0 : vector<1x64x8xf32> to vector<64x8xf32>
    %2 = arith.truncf %1 : vector<64x8xf32> to vector<64x8xbf16>
    %c0_2 = arith.constant 0 : index
    %c0_3 = arith.constant 0 : index
    %c0_4 = arith.constant 0 : index
    %3 = vector.load %arg2[%c0_2, %c0_3, %c0_4] : memref<1x64x64xbf16, #tpu.memory_space<vmem>>, vector<1x64x64xbf16>
    %4 = vector.shape_cast %3 : vector<1x64x64xbf16> to vector<64x64xbf16>
    %c0_5 = arith.constant 0 : index
    %c0_6 = arith.constant 0 : index
    %5 = vector.load %arg3[%c0_5, %c0_6] : memref<8x64xbf16, #tpu.memory_space<vmem>>, vector<8x64xbf16>
    %cst = arith.constant dense<0.000000e+00> : vector<64x64xf32>
    %6 = tpu.matmul %2, %5, %cst {dimension_numbers = #tpu.dot_dimension_numbers<[1], [0], [0], [1], [0, 0, 1, 1], [], []>} : vector<64x8xbf16>, vector<8x64xbf16>, vector<64x64xf32> -> vector<64x64xf32>
    %c0_7 = arith.constant 0 : index
    %c0_8 = arith.constant 0 : index
    %7 = vector.load %arg4[%c0_7, %c0_8] : memref<1x64xf32, #tpu.memory_space<vmem>>, vector<1x64xf32>
    %8 = vector.broadcast %7 : vector<1x64xf32> to vector<64x64xf32>
    %9 = arith.addf %6, %8 : vector<64x64xf32>
    %cst_9 = arith.constant 0.000000e+00 : f32
    %10 = vector.broadcast %cst_9 : f32 to vector<64x64xf32>
    %11 = arith.maximumf %9, %10 : vector<64x64xf32>
    %12 = arith.truncf %11 : vector<64x64xf32> to vector<64x64xbf16>
    %c0_10 = arith.constant 0 : index
    %c0_11 = arith.constant 0 : index
    %13 = vector.load %arg5[%c0_10, %c0_11] : memref<64x64xbf16, #tpu.memory_space<vmem>>, vector<64x64xbf16>
    %cst_12 = arith.constant dense<0.000000e+00> : vector<64x64xf32>
    %14 = tpu.matmul %12, %13, %cst_12 {dimension_numbers = #tpu.dot_dimension_numbers<[1], [0], [0], [1], [0, 0, 1, 1], [], []>} : vector<64x64xbf16>, vector<64x64xbf16>, vector<64x64xf32> -> vector<64x64xf32>
    %c0_13 = arith.constant 0 : index
    %c0_14 = arith.constant 0 : index
    %15 = vector.load %arg6[%c0_13, %c0_14] : memref<1x64xf32, #tpu.memory_space<vmem>>, vector<1x64xf32>
    %16 = vector.broadcast %15 : vector<1x64xf32> to vector<64x64xf32>
    %17 = arith.addf %14, %16 : vector<64x64xf32>
    %cst_15 = arith.constant 0.000000e+00 : f32
    %18 = vector.broadcast %cst_15 : f32 to vector<64x64xf32>
    %19 = arith.maximumf %17, %18 : vector<64x64xf32>
    %20 = arith.truncf %19 : vector<64x64xf32> to vector<64x64xbf16>
    %c0_16 = arith.constant 0 : index
    %c0_17 = arith.constant 0 : index
    %21 = vector.load %arg9[%c0_16, %c0_17] : memref<8x128xbf16, #tpu.memory_space<vmem>>, vector<8x128xbf16>
    %cst_18 = arith.constant dense<0.000000e+00> : vector<64x128xf32>
    %22 = tpu.matmul %2, %21, %cst_18 {dimension_numbers = #tpu.dot_dimension_numbers<[1], [0], [0], [1], [0, 0, 1, 1], [], []>} : vector<64x8xbf16>, vector<8x128xbf16>, vector<64x128xf32> -> vector<64x128xf32>
    %c0_19 = arith.constant 0 : index
    %c0_20 = arith.constant 0 : index
    %23 = vector.load %arg7[%c0_19, %c0_20] : memref<64x128xbf16, #tpu.memory_space<vmem>>, vector<64x128xbf16>
    %cst_21 = arith.constant dense<0.000000e+00> : vector<64x128xf32>
    %24 = tpu.matmul %20, %23, %cst_21 {dimension_numbers = #tpu.dot_dimension_numbers<[1], [0], [0], [1], [0, 0, 1, 1], [], []>} : vector<64x64xbf16>, vector<64x128xbf16>, vector<64x128xf32> -> vector<64x128xf32>
    %25 = arith.addf %24, %22 : vector<64x128xf32>
    %cst_22 = arith.constant dense<0x7F800000> : vector<128xf32>
    %26 = vector.multi_reduction <minimumf>, %25, %cst_22 [0] : vector<64x128xf32> to vector<128xf32>
    %27 = vector.shape_cast %26 : vector<128xf32> to vector<1x128xf32>
    %28 = vector.broadcast %27 : vector<1x128xf32> to vector<64x128xf32>
    %29 = arith.subf %28, %25 : vector<64x128xf32>
    %30 = math.exp %29 : vector<64x128xf32>
    %31 = arith.truncf %30 : vector<64x128xf32> to vector<64x128xbf16>
    %cst_23 = arith.constant dense<0.000000e+00> : vector<64x128xf32>
    %32 = tpu.matmul %4, %31, %cst_23 {dimension_numbers = #tpu.dot_dimension_numbers<[1], [0], [0], [1], [0, 0, 1, 1], [], []>} : vector<64x64xbf16>, vector<64x128xbf16>, vector<64x128xf32> -> vector<64x128xf32>
    %c0_24 = arith.constant 0 : index
    %c0_25 = arith.constant 0 : index
    %33 = vector.load %arg8[%c0_24, %c0_25] : memref<64x128xbf16, #tpu.memory_space<vmem>>, vector<64x128xbf16>
    %cst_26 = arith.constant dense<0.000000e+00> : vector<64x128xf32>
    %34 = tpu.matmul %20, %33, %cst_26 {dimension_numbers = #tpu.dot_dimension_numbers<[1], [0], [0], [1], [0, 0, 1, 1], [], []>} : vector<64x64xbf16>, vector<64x128xbf16>, vector<64x128xf32> -> vector<64x128xf32>
    %35 = arith.subf %34, %22 : vector<64x128xf32>
    %36 = arith.mulf %30, %35 : vector<64x128xf32>
    %37 = arith.truncf %36 : vector<64x128xf32> to vector<64x128xbf16>
    %cst_27 = arith.constant dense<0.000000e+00> : vector<64x128xf32>
    %38 = tpu.matmul %4, %37, %cst_27 {dimension_numbers = #tpu.dot_dimension_numbers<[1], [0], [0], [1], [0, 0, 1, 1], [], []>} : vector<64x64xbf16>, vector<64x128xbf16>, vector<64x128xf32> -> vector<64x128xf32>
    %cst_28 = arith.constant 1.000000e-30 : f32
    %39 = vector.broadcast %cst_28 : f32 to vector<64x128xf32>
    %40 = arith.maximumf %32, %39 : vector<64x128xf32>
    %41 = tpu.reciprocal %40 {approx = true} : vector<64x128xf32> -> vector<64x128xf32>
    %42 = arith.mulf %38, %41 : vector<64x128xf32>
    %43 = arith.addf %42, %22 : vector<64x128xf32>
    %c0_29 = arith.constant 0 : index
    %c0_30 = arith.constant 0 : index
    %44 = vector.load %arg10[%c0_29, %c0_30] : memref<1x128xf32, #tpu.memory_space<vmem>>, vector<1x128xf32>
    %45 = vector.broadcast %44 : vector<1x128xf32> to vector<64x128xf32>
    %46 = arith.addf %43, %45 : vector<64x128xf32>
    %c0_31 = arith.constant 0 : index
    %c0_32 = arith.constant 0 : index
    %47 = vector.load %arg11[%c0_31, %c0_32] : memref<1x128xf32, #tpu.memory_space<vmem>>, vector<1x128xf32>
    %48 = vector.broadcast %47 : vector<1x128xf32> to vector<64x128xf32>
    %49 = arith.mulf %46, %48 : vector<64x128xf32>
    %c0_33 = arith.constant 0 : index
    %c0_34 = arith.constant 0 : index
    %50 = vector.load %arg12[%c0_33, %c0_34] : memref<1x128xf32, #tpu.memory_space<vmem>>, vector<1x128xf32>
    %51 = vector.broadcast %50 : vector<1x128xf32> to vector<64x128xf32>
    %52 = arith.addf %49, %51 : vector<64x128xf32>
    %cst_35 = arith.constant 0.000000e+00 : f32
    %53 = vector.broadcast %cst_35 : f32 to vector<64x128xf32>
    %54 = arith.maximumf %52, %53 : vector<64x128xf32>
    %55 = arith.truncf %54 : vector<64x128xf32> to vector<64x128xbf16>
    %c0_36 = arith.constant 0 : index
    %c0_37 = arith.constant 0 : index
    %56 = vector.load %arg15[%c0_36, %c0_37] : memref<8x128xbf16, #tpu.memory_space<vmem>>, vector<8x128xbf16>
    %cst_38 = arith.constant dense<0.000000e+00> : vector<64x128xf32>
    %57 = tpu.matmul %2, %56, %cst_38 {dimension_numbers = #tpu.dot_dimension_numbers<[1], [0], [0], [1], [0, 0, 1, 1], [], []>} : vector<64x8xbf16>, vector<8x128xbf16>, vector<64x128xf32> -> vector<64x128xf32>
    %c0_39 = arith.constant 0 : index
    %c0_40 = arith.constant 0 : index
    %58 = vector.load %arg13[%c0_39, %c0_40] : memref<128x128xbf16, #tpu.memory_space<vmem>>, vector<128x128xbf16>
    %cst_41 = arith.constant dense<0.000000e+00> : vector<64x128xf32>
    %59 = tpu.matmul %55, %58, %cst_41 {dimension_numbers = #tpu.dot_dimension_numbers<[1], [0], [0], [1], [0, 0, 1, 1], [], []>} : vector<64x128xbf16>, vector<128x128xbf16>, vector<64x128xf32> -> vector<64x128xf32>
    %60 = arith.addf %59, %57 : vector<64x128xf32>
    %cst_42 = arith.constant dense<0x7F800000> : vector<128xf32>
    %61 = vector.multi_reduction <minimumf>, %60, %cst_42 [0] : vector<64x128xf32> to vector<128xf32>
    %62 = vector.shape_cast %61 : vector<128xf32> to vector<1x128xf32>
    %63 = vector.broadcast %62 : vector<1x128xf32> to vector<64x128xf32>
    %64 = arith.subf %63, %60 : vector<64x128xf32>
    %65 = math.exp %64 : vector<64x128xf32>
    %66 = arith.truncf %65 : vector<64x128xf32> to vector<64x128xbf16>
    %cst_43 = arith.constant dense<0.000000e+00> : vector<64x128xf32>
    %67 = tpu.matmul %4, %66, %cst_43 {dimension_numbers = #tpu.dot_dimension_numbers<[1], [0], [0], [1], [0, 0, 1, 1], [], []>} : vector<64x64xbf16>, vector<64x128xbf16>, vector<64x128xf32> -> vector<64x128xf32>
    %c0_44 = arith.constant 0 : index
    %c0_45 = arith.constant 0 : index
    %68 = vector.load %arg14[%c0_44, %c0_45] : memref<128x128xbf16, #tpu.memory_space<vmem>>, vector<128x128xbf16>
    %cst_46 = arith.constant dense<0.000000e+00> : vector<64x128xf32>
    %69 = tpu.matmul %55, %68, %cst_46 {dimension_numbers = #tpu.dot_dimension_numbers<[1], [0], [0], [1], [0, 0, 1, 1], [], []>} : vector<64x128xbf16>, vector<128x128xbf16>, vector<64x128xf32> -> vector<64x128xf32>
    %70 = arith.subf %69, %57 : vector<64x128xf32>
    %71 = arith.mulf %65, %70 : vector<64x128xf32>
    %72 = arith.truncf %71 : vector<64x128xf32> to vector<64x128xbf16>
    %cst_47 = arith.constant dense<0.000000e+00> : vector<64x128xf32>
    %73 = tpu.matmul %4, %72, %cst_47 {dimension_numbers = #tpu.dot_dimension_numbers<[1], [0], [0], [1], [0, 0, 1, 1], [], []>} : vector<64x64xbf16>, vector<64x128xbf16>, vector<64x128xf32> -> vector<64x128xf32>
    %cst_48 = arith.constant 1.000000e-30 : f32
    %74 = vector.broadcast %cst_48 : f32 to vector<64x128xf32>
    %75 = arith.maximumf %67, %74 : vector<64x128xf32>
    %76 = tpu.reciprocal %75 {approx = true} : vector<64x128xf32> -> vector<64x128xf32>
    %77 = arith.mulf %73, %76 : vector<64x128xf32>
    %78 = arith.addf %77, %57 : vector<64x128xf32>
    %c0_49 = arith.constant 0 : index
    %c0_50 = arith.constant 0 : index
    %79 = vector.load %arg16[%c0_49, %c0_50] : memref<1x128xf32, #tpu.memory_space<vmem>>, vector<1x128xf32>
    %80 = vector.broadcast %79 : vector<1x128xf32> to vector<64x128xf32>
    %81 = arith.addf %78, %80 : vector<64x128xf32>
    %c0_51 = arith.constant 0 : index
    %c0_52 = arith.constant 0 : index
    %82 = vector.load %arg17[%c0_51, %c0_52] : memref<1x128xf32, #tpu.memory_space<vmem>>, vector<1x128xf32>
    %83 = vector.broadcast %82 : vector<1x128xf32> to vector<64x128xf32>
    %84 = arith.mulf %81, %83 : vector<64x128xf32>
    %c0_53 = arith.constant 0 : index
    %c0_54 = arith.constant 0 : index
    %85 = vector.load %arg18[%c0_53, %c0_54] : memref<1x128xf32, #tpu.memory_space<vmem>>, vector<1x128xf32>
    %86 = vector.broadcast %85 : vector<1x128xf32> to vector<64x128xf32>
    %87 = arith.addf %84, %86 : vector<64x128xf32>
    %cst_55 = arith.constant 0.000000e+00 : f32
    %88 = vector.broadcast %cst_55 : f32 to vector<64x128xf32>
    %89 = arith.maximumf %87, %88 : vector<64x128xf32>
    %90 = arith.truncf %89 : vector<64x128xf32> to vector<64x128xbf16>
    %c0_56 = arith.constant 0 : index
    %c0_57 = arith.constant 0 : index
    %91 = vector.load %arg19[%c0_56, %c0_57] : memref<128x128xbf16, #tpu.memory_space<vmem>>, vector<128x128xbf16>
    %cst_58 = arith.constant dense<0.000000e+00> : vector<64x128xf32>
    %92 = tpu.matmul %90, %91, %cst_58 {dimension_numbers = #tpu.dot_dimension_numbers<[1], [0], [0], [1], [0, 0, 1, 1], [], []>} : vector<64x128xbf16>, vector<128x128xbf16>, vector<64x128xf32> -> vector<64x128xf32>
    %c0_59 = arith.constant 0 : index
    %c0_60 = arith.constant 0 : index
    %93 = vector.load %arg20[%c0_59, %c0_60] : memref<1x128xf32, #tpu.memory_space<vmem>>, vector<1x128xf32>
    %94 = vector.broadcast %93 : vector<1x128xf32> to vector<64x128xf32>
    %95 = arith.addf %92, %94 : vector<64x128xf32>
    %cst_61 = arith.constant 0.000000e+00 : f32
    %96 = vector.broadcast %cst_61 : f32 to vector<64x128xf32>
    %97 = arith.maximumf %95, %96 : vector<64x128xf32>
    %98 = arith.truncf %97 : vector<64x128xf32> to vector<64x128xbf16>
    %c0_62 = arith.constant 0 : index
    %c0_63 = arith.constant 0 : index
    %99 = vector.load %arg21[%c0_62, %c0_63] : memref<128x128xbf16, #tpu.memory_space<vmem>>, vector<128x128xbf16>
    %cst_64 = arith.constant dense<0.000000e+00> : vector<64x128xf32>
    %100 = tpu.matmul %98, %99, %cst_64 {dimension_numbers = #tpu.dot_dimension_numbers<[1], [0], [0], [1], [0, 0, 1, 1], [], []>} : vector<64x128xbf16>, vector<128x128xbf16>, vector<64x128xf32> -> vector<64x128xf32>
    %c0_65 = arith.constant 0 : index
    %c0_66 = arith.constant 0 : index
    %101 = vector.load %arg22[%c0_65, %c0_66] : memref<1x128xf32, #tpu.memory_space<vmem>>, vector<1x128xf32>
    %102 = vector.broadcast %101 : vector<1x128xf32> to vector<64x128xf32>
    %103 = arith.addf %100, %102 : vector<64x128xf32>
    %c0_67 = arith.constant 0 : index
    %c0_68 = arith.constant 0 : index
    %c0_69 = arith.constant 0 : index
    %104 = vector.load %arg23[%c0_67, %c0_68, %c0_69] : memref<1x64x128xf32, #tpu.memory_space<vmem>>, vector<1x64x128xf32>
    %105 = vector.shape_cast %104 : vector<1x64x128xf32> to vector<64x128xf32>
    %106 = vector.shape_cast %103 : vector<64x128xf32> to vector<1x64x128xf32>
    tpu.vector_store %arg23[%c0_67, %c0_68, %c0_69], %106 {strides = array<i32>} : memref<1x64x128xf32, #tpu.memory_space<vmem>>, vector<1x64x128xf32>,
    return
  }
  func.func @transform_0(%arg0: i32) -> (i32, i32, i32) {
    %c0_i32 = arith.constant 0 : i32
    %c0_i32_0 = arith.constant 0 : i32
    %c0_i32_1 = arith.constant 0 : i32
    return %arg0, %c0_i32, %c0_i32_0 : i32, i32, i32
  }
  func.func @transform_1(%arg0: i32) -> (i32, i32, i32) {
    %c0_i32 = arith.constant 0 : i32
    %c0_i32_0 = arith.constant 0 : i32
    %c0_i32_1 = arith.constant 0 : i32
    return %arg0, %c0_i32, %c0_i32_0 : i32, i32, i32
  }
  func.func @transform_2(%arg0: i32) -> (i32, i32) {
    %c0_i32 = arith.constant 0 : i32
    %c0_i32_0 = arith.constant 0 : i32
    %c0_i32_1 = arith.constant 0 : i32
    return %c0_i32, %c0_i32_0 : i32, i32
  }
  func.func @transform_3(%arg0: i32) -> (i32, i32) {
    %c0_i32 = arith.constant 0 : i32
    %c0_i32_0 = arith.constant 0 : i32
    %c0_i32_1 = arith.constant 0 : i32
    return %c0_i32, %c0_i32_0 : i32, i32
  }
  func.func @transform_4(%arg0: i32) -> (i32, i32) {
    %c0_i32 = arith.constant 0 : i32
    %c0_i32_0 = arith.constant 0 : i32
    %c0_i32_1 = arith.constant 0 : i32
    return %c0_i32, %c0_i32_0 : i32, i32
  }
  func.func @transform_5(%arg0: i32) -> (i32, i32) {
    %c0_i32 = arith.constant 0 : i32
    %c0_i32_0 = arith.constant 0 : i32
    %c0_i32_1 = arith.constant 0 : i32
    return %c0_i32, %c0_i32_0 : i32, i32
  }
  func.func @transform_6(%arg0: i32) -> (i32, i32) {
    %c0_i32 = arith.constant 0 : i32
    %c0_i32_0 = arith.constant 0 : i32
    %c0_i32_1 = arith.constant 0 : i32
    return %c0_i32, %c0_i32_0 : i32, i32
  }
  func.func @transform_7(%arg0: i32) -> (i32, i32) {
    %c0_i32 = arith.constant 0 : i32
    %c0_i32_0 = arith.constant 0 : i32
    %c0_i32_1 = arith.constant 0 : i32
    return %c0_i32, %c0_i32_0 : i32, i32
  }
  func.func @transform_8(%arg0: i32) -> (i32, i32) {
    %c0_i32 = arith.constant 0 : i32
    %c0_i32_0 = arith.constant 0 : i32
    %c0_i32_1 = arith.constant 0 : i32
    return %c0_i32, %c0_i32_0 : i32, i32
  }
  func.func @transform_9(%arg0: i32) -> (i32, i32) {
    %c0_i32 = arith.constant 0 : i32
    %c0_i32_0 = arith.constant 0 : i32
    %c0_i32_1 = arith.constant 0 : i32
    return %c0_i32, %c0_i32_0 : i32, i32
  }
  func.func @transform_10(%arg0: i32) -> (i32, i32) {
    %c0_i32 = arith.constant 0 : i32
    %c0_i32_0 = arith.constant 0 : i32
    %c0_i32_1 = arith.constant 0 : i32
    return %c0_i32, %c0_i32_0 : i32, i32
  }
  func.func @transform_11(%arg0: i32) -> (i32, i32) {
    %c0_i32 = arith.constant 0 : i32
    %c0_i32_0 = arith.constant 0 : i32
    %c0_i32_1 = arith.constant 0 : i32
    return %c0_i32, %c0_i32_0 : i32, i32
  }
  func.func @transform_12(%arg0: i32) -> (i32, i32) {
    %c0_i32 = arith.constant 0 : i32
    %c0_i32_0 = arith.constant 0 : i32
    %c0_i32_1 = arith.constant 0 : i32
    return %c0_i32, %c0_i32_0 : i32, i32
  }
  func.func @transform_13(%arg0: i32) -> (i32, i32) {
    %c0_i32 = arith.constant 0 : i32
    %c0_i32_0 = arith.constant 0 : i32
    %c0_i32_1 = arith.constant 0 : i32
    return %c0_i32, %c0_i32_0 : i32, i32
  }
  func.func @transform_14(%arg0: i32) -> (i32, i32) {
    %c0_i32 = arith.constant 0 : i32
    %c0_i32_0 = arith.constant 0 : i32
    %c0_i32_1 = arith.constant 0 : i32
    return %c0_i32, %c0_i32_0 : i32, i32
  }
  func.func @transform_15(%arg0: i32) -> (i32, i32) {
    %c0_i32 = arith.constant 0 : i32
    %c0_i32_0 = arith.constant 0 : i32
    %c0_i32_1 = arith.constant 0 : i32
    return %c0_i32, %c0_i32_0 : i32, i32
  }
  func.func @transform_16(%arg0: i32) -> (i32, i32) {
    %c0_i32 = arith.constant 0 : i32
    %c0_i32_0 = arith.constant 0 : i32
    %c0_i32_1 = arith.constant 0 : i32
    return %c0_i32, %c0_i32_0 : i32, i32
  }
  func.func @transform_17(%arg0: i32) -> (i32, i32) {
    %c0_i32 = arith.constant 0 : i32
    %c0_i32_0 = arith.constant 0 : i32
    %c0_i32_1 = arith.constant 0 : i32
    return %c0_i32, %c0_i32_0 : i32, i32
  }
  func.func @transform_18(%arg0: i32) -> (i32, i32) {
    %c0_i32 = arith.constant 0 : i32
    %c0_i32_0 = arith.constant 0 : i32
    %c0_i32_1 = arith.constant 0 : i32
    return %c0_i32, %c0_i32_0 : i32, i32
  }
  func.func @transform_19(%arg0: i32) -> (i32, i32) {
    %c0_i32 = arith.constant 0 : i32
    %c0_i32_0 = arith.constant 0 : i32
    %c0_i32_1 = arith.constant 0 : i32
    return %c0_i32, %c0_i32_0 : i32, i32
  }
  func.func @transform_20(%arg0: i32) -> (i32, i32) {
    %c0_i32 = arith.constant 0 : i32
    %c0_i32_0 = arith.constant 0 : i32
    %c0_i32_1 = arith.constant 0 : i32
    return %c0_i32, %c0_i32_0 : i32, i32
  }
  func.func @transform_21(%arg0: i32) -> (i32, i32) {
    %c0_i32 = arith.constant 0 : i32
    %c0_i32_0 = arith.constant 0 : i32
    %c0_i32_1 = arith.constant 0 : i32
    return %c0_i32, %c0_i32_0 : i32, i32
  }
  func.func @transform_22(%arg0: i32) -> (i32, i32, i32) {
    %c0_i32 = arith.constant 0 : i32
    %c0_i32_0 = arith.constant 0 : i32
    %c0_i32_1 = arith.constant 0 : i32
    return %arg0, %c0_i32, %c0_i32_0 : i32, i32, i32
  }
}

</mosaic_0001>

<bundles_post_ra>
// kernel: tpu_custom_call.1
= control target key start
LH: loop header
LB: loop body
LE: loop exit
PB: predicated region body
PF: predicated region fallthrough
CT: control target
= control target key end

     0   :  { %s3549_s0 = inlined_call_operand.vmem [shape: f32[2,64,8], index: 0, kind: input, shape index: {}]   ;;  %s3550_s1 = inlined_call_operand.vmem [shape: bf16[2,64,64], index: 1, kind: input, shape index: {}]   ;;  %s3551_s2 = inlined_call_operand.vmem [shape: bf16[8,64], index: 2, kind: input, shape index: {}]   ;;  %s3552_s3 = inlined_call_operand.vmem [shape: f32[1,64], index: 3, kind: input, shape index: {}]   ;;  %s3553_s4 = inlined_call_operand.hbm [shape: bf16[64,64], index: 4, kind: input, shape index: {}]   ;;  %s3554_s5 = inlined_call_operand.vmem [shape: f32[1,64], index: 5, kind: input, shape index: {}]   ;;  %s3555_s6 = inlined_call_operand.hbm [shape: bf16[64,128], index: 6, kind: input, shape index: {}]   ;;  %s3556_s7 = inlined_call_operand.hbm [shape: bf16[64,128], index: 7, kind: input, shape index: {}]   ;;  %s3557_s8 = inlined_call_operand.vmem [shape: bf16[8,128], index: 8, kind: input, shape index: {}]   ;;  %s3558_s9 = inlined_call_operand.vmem [shape: f32[1,128], index: 9, kind: input, shape index: {}]   ;;  %s3559_s10 = inlined_call_operand.vmem [shape: f32[1,128], index: 10, kind: input, shape index: {}]   ;;  %s3560_s11 = inlined_call_operand.vmem [shape: f32[1,128], index: 11, kind: input, shape index: {}]   ;;  %s3561_s12 = inlined_call_operand.vmem [shape: bf16[128,128], index: 12, kind: input, shape index: {}]   ;;  %s3562_s13 = inlined_call_operand.hbm [shape: bf16[128,128], index: 13, kind: input, shape index: {}]   ;;  %s3563_s14 = inlined_call_operand.vmem [shape: bf16[8,128], index: 14, kind: input, shape index: {}]   ;;  %s3564_s15 = inlined_call_operand.vmem [shape: f32[1,128], index: 15, kind: input, shape index: {}]   ;;  %s3565_s16 = inlined_call_operand.vmem [shape: f32[1,128], index: 16, kind: input, shape index: {}]   ;;  %s3566_s17 = inlined_call_operand.vmem [shape: f32[1,128], index: 17, kind: input, shape index: {}]   ;;  %s3567_s18 = inlined_call_operand.hbm [shape: bf16[128,128], index: 18, kind: input, shape index: {}]   ;;  %s3568_s19 = inlined_call_operand.vmem [shape: f32[1,128], index: 19, kind: input, shape index: {}]   ;;  %s3569_s20 = inlined_call_operand.hbm [shape: bf16[128,128], index: 20, kind: input, shape index: {}]   ;;  %s3570_s21 = inlined_call_operand.vmem [shape: f32[1,128], index: 21, kind: input, shape index: {}]   ;;  %s3571_s22 = inlined_call_operand.hbm [shape: f32[2,64,128], index: 22, kind: output, shape index: {}]  }
   0x1   :  { %3583 = sst [smem:[#allocation27_spill]] %s3549_s0 }
   0x2   :  { %3584 = sst [smem:[#allocation28_spill]] %s3550_s1 }
   0x3   :  { %3585 = sst [smem:[#allocation29_spill]] %s3551_s2 }
   0x4   :  { %3586 = sst [smem:[#allocation30_spill]] %s3552_s3 }
   0x5   :  { %3587 = sst [smem:[#allocation31_spill]] %s3553_s4 }
   0x6   :  { %3588 = sst [smem:[#allocation32_spill]] %s3554_s5 }
   0x7   :  { %3589 = sst [smem:[#allocation33_spill]] %s3555_s6 }
   0x8   :  { %3590 = sst [smem:[#allocation34_spill]] %s3562_s13 }
   0x9   :  { %3591 = sst [smem:[#allocation35_spill]] %s3570_s21 }
   0xa   :  { %3592 = sst [smem:[#allocation36_spill]] %s3571_s22 }
   0xb   :  { %27 = vsyncpa [#allocation3], 0 }
   0xc   :  { %28 = vsyncpa [#allocation6], 0 }
   0xd   :  { %29 = vsyncpa [#allocation9], 0 }
   0xe   :  { %30 = vsyncpa [#allocation12], 0 }
   0xf   :  { %31 = vsyncpa [#allocation4], 0 }
  0x10   :  { %33 = vsyncpa [#allocation4 + $0x1], 0  ;;  %s3036_s3 = smov 0   ;;  %s3038_s28 = smov 0  }
  0x11   :  { %s3040_s29 = smov 0   ;;  %s3042_s30 = smov 0  }
  0x12 LB: > { %3593 = sst [smem:[#allocation19_spill]] %s2897_s3  ;;  %s3057_s4 = sadd.s32 4294967295, %s2909_s30   ;;  %s2909_s30 = sphi %s3042_s30, %s3620_s30   ;;  %s2905_s29 = sphi %s3040_s29, %s3623_s29   ;;  %s2901_s28 = sphi %s3038_s28, %s3622_s28   ;;  %s2897_s3 = sphi %s3036_s3, %s3621_s3  }
  0x13   : > { %3594 = sst [smem:[#allocation20_spill]] %s2901_s28  ;;  %s2156_s0 = sadd.s32 4294967294, %s2909_s30  }
  0x14   : > { %3595 = sst [smem:[#allocation21_spill]] %s2905_s29  ;;  %s3061_s23 = sadd.s32 1, %s2909_s30  }
  0x15   : > { %3596 = sst [smem:[#allocation22_spill]] %s2909_s30  ;;  %s518_s1 = sadd.s32 1, %s2905_s29 }
  0x16   : > { %3597 = sst [smem:[#allocation23_spill]] %s3061_s23  ;;  %s515_s5 = ssub.s32 %s2909_s30, %s3061_s23 }
  0x17   : > { %p528_p0 = scmp.ne.s32.totalorder %s2905_s29, %s2901_s28  ;;  %p516_p1 = scmp.eq.s32.totalorder %s515_s5, 0 }
  0x18   : > { %p529_p2 = scmp.eq.s32.totalorder %s3057_s4, 1  ;;  %p534_p3 = scmp.ne.s32.totalorder %s2901_s28, %s2897_s3 }
  0x19   : > { %p535_p4 = scmp.eq.s32.totalorder %s2156_s0, 1  ;;  %p2157_p7 = scmp.ge.s32.totalorder %s2909_s30, 1 }
  0x1a   : > { %s3072_s24 = scalar_select %p516_p1, %s2905_s29, %s518_s1  }
  0x1b   : > { %p3074_p5 = por %p529_p2, %p528_p0  ;;  %p3078_p6 = por %p535_p4, %p534_p3 }
  0x1c   : > { %3598 = sst [smem:[#allocation24_spill]] %s3072_s24  ;;  %p542_p8 = scmp.lt.s32.totalorder %s2909_s30, 3 }
  0x1d   : > { %s3599_s6 = scalar_select %p3074_p5, 1, 0 }
  0x1e   : > { %s3601_s25 = scalar_select %p3078_p6, 1, 0 }
  0x1f   : > { %3600 = sst [smem:[#allocation25_spill]] %s3599_s6  ;;  %p2522_p9 = scmp.eq.s32.totalorder %s3057_s4, 0 }
  0x20   : > { %3602 = sst [smem:[#allocation26_spill]] %s3601_s25  ;;  %p3085_p10 = pnand %p2157_p7, %p542_p8 }
  0x21   : > { %s3604_s0 = sld [smem:[#allocation33_spill]]  ;;  %s2911_s25 = smov [#allocation5]  }
  0x22   : > { %p2499_p11 = pneg %p3085_p10  ;;  %s3605_s13 = sld [smem:[#allocation34_spill]] }
  0x23   : > { %s578_s3 = sshll.u32 %s2911_s25, 4  ;;  %s2912_s2 = smov 64   ;;  %s579_s3 = int_to_ptr.vmem [resolvable:$true] %s578_s3 }
  0x24   : > { %p3099_p12 = pnand %p2522_p9, %p2499_p11  ;;  %s2913_s27 = smov 4  }
  0x25   : > { %s2914_s24 = smov [#allocation8]   ;;  %s3607_s30 = sld [smem:[#allocation31_spill]] }
  0x26   : > { %s590_s21 = sshll.u32 %s3556_s7, 4  ;;  %s2915_s28 = smov [#allocation2]   ;;  %s591_s21 = int_to_ptr.hbm [resolvable:$true] %s590_s21 }
  0x27   : > { %s576_s1 = sshll.u32 %s3604_s0, 4  ;;  %s621_s0 = sshll.u32 %s2914_s24, 4  ;;  %s577_s1 = int_to_ptr.hbm [resolvable:$true] %s576_s1  ;;  %s622_s0 = int_to_ptr.vmem [resolvable:$true] %s621_s0 }
  0x28   : > { %s619_s29 = sshll.u32 %s3605_s13, 4  ;;  %s2916_s13 = smov [#allocation7]   ;;  %s620_s29 = int_to_ptr.hbm [resolvable:$true] %s619_s29 }
  0x29   : > { %2505 = dma.hbm_to_vmem [thread:$0]  (!%p3099_p12), %s577_s1, 512, %s579_s3, [#allocation6], %s2912_s2, %s2912_s2, %s2913_s27  }
  0x2a   : > { %2511 = dma.hbm_to_vmem [thread:$0]  (!%p3099_p12), %s620_s29, 1024, %s622_s0, [#allocation9], %s2912_s2, %s2912_s2, %s2913_s27  }
  0x2b   : > { %s559_s22 = sshll.u32 %s3607_s30, 4  ;;  %s561_s3 = sshll.u32 %s2915_s28, 4  ;;  %s560_s22 = int_to_ptr.hbm [resolvable:$true] %s559_s22  ;;  %s562_s3 = int_to_ptr.vmem [resolvable:$true] %s561_s3 }
  0x2c   : > { %2502 = dma.hbm_to_vmem [thread:$0]  (!%p3099_p12), %s560_s22, 512, %s562_s3, [#allocation3], %s2912_s2, %s2912_s2, %s2913_s27  }
  0x2d   : > { %s592_s30 = sshll.u32 %s2916_s13, 4  ;;  %s645_s29 = sshll.u32 %s3567_s18, 4  ;;  %s593_s30 = int_to_ptr.vmem [resolvable:$true] %s592_s30  ;;  %s646_s29 = int_to_ptr.hbm [resolvable:$true] %s645_s29 }
  0x2e   : > { %2508 = dma.hbm_to_vmem [thread:$0]  (!%p3099_p12), %s591_s21, 512, %s593_s30, [#allocation6], %s2912_s2, %s2912_s2, %s2913_s27  }
  0x2f   : > { %s662_s0 = sshll.u32 %s3569_s20, 4  ;;  %s2917_s5 = smov [#allocation10]   ;;  %s663_s0 = int_to_ptr.hbm [resolvable:$true] %s662_s0 }
  0x30   : > { %s647_s22 = sshll.u32 %s2917_s5, 4  ;;  %s2918_s25 = smov [#allocation11]   ;;  %s648_s22 = int_to_ptr.vmem [resolvable:$true] %s647_s22 }
  0x31   : > { %2514 = dma.hbm_to_vmem [thread:$0]  (!%p3099_p12), %s646_s29, 1024, %s648_s22, [#allocation9], %s2912_s2, %s2912_s2, %s2913_s27  }
  0x32   : > { %s664_s3 = sshll.u32 %s2918_s25, 4  ;;  %699 = sbr.rel (%p3085_p10) target bundleno = 1522 (0x5f2), region = 108  ;;  %s665_s3 = int_to_ptr.vmem [resolvable:$true] %s664_s3 }
  0x33   : > { %2517 = dma.hbm_to_vmem [thread:$0]  (!%p3099_p12), %s663_s0, 1024, %s665_s3, [#allocation12], %s2912_s2, %s2912_s2, %s2913_s27  }
  0x37   : > { %2876 = dma.done.wait (%p2522_p9), [#allocation3], 512  }
  0x38   : > { %2878 = vsyncadd (%p2522_p9), [#allocation3], 4294966784 }
  0x39   : > { %2880 = dma.done.wait (%p2522_p9), [#allocation6], 1024  }
  0x3a   : > { %2882 = vsyncadd (%p2522_p9), [#allocation6], 4294966272 }
  0x3b   : > { %2884 = dma.done.wait (%p2522_p9), [#allocation9], 2048  }
  0x3c   : > { %2886 = vsyncadd (%p2522_p9), [#allocation9], 4294965248 }
  0x3d   : > { %2888 = dma.done.wait (%p2522_p9), [#allocation12], 1024  }
  0x3e   : > { %2890 = vsyncadd (%p2522_p9), [#allocation12], 4294966272  ;;  %p792_p13 = scmp.lt.s32.totalorder %s3057_s4, 1  ;;  %vm841_vm0 = vcmask 1043456   ;;  %s3608_s27 = sld [smem:[#allocation27_spill]]  ;;  %vm828_vm1 = vcmask 64512  }
  0x3f   : > { %s3609_s24 = sld [smem:[#allocation29_spill]]  ;;  %v2423_v14 = vld [vmem:[#allocation2 + $0x18] sm:$0xff]  ;;  %v2422_v15 = vld [vmem:[#allocation2 + $0x10] sm:$0xff]  ;;  %v2421_v16 = vld [vmem:[#allocation2 + $0x8] sm:$0xff]  ;;  %vm922_vm2 = vcmask 523264   ;;  %s2464_s28 = sshll.u32 %s3057_s4, 6 }
  0x40   : > { %s3165_s21 = scalar_select %p792_p13, %s3057_s4, 1  ;;  %939 = vmatpush.bf16.msra.mxu1 %v2423_v14  ;;  %v2420_v17 = vld [vmem:[#allocation2] sm:$0xff]  ;;  %v2427_v49 = vld [vmem:[#allocation5 + $0x18] sm:$0xff]  ;;  %v2426_v51 = vld [vmem:[#allocation5 + $0x10] sm:$0xff] }
  0x41   : > { %s3610_s6 = sld [smem:[#allocation30_spill]]  ;;  %v976_v33 = vld [vmem:[%s3557_s8] sm:$0xf]  ;;  %v2431_v50 = vld [vmem:[#allocation7 + $0x18] sm:$0xff]  ;;  %1057 = vmatpush.bf16.msra.mxu3 %v2427_v49  ;;  %v2430_v52 = vld [vmem:[#allocation7 + $0x10] sm:$0xff] }
  0x42   : > { %s2414_s23 = sshll.u32 %s3165_s21, 6  ;;  %v978_v35 = vsel %vm841_vm0, %v976_v33, 0  ;;  %v2425_v53 = vld [vmem:[#allocation5 + $0x8] sm:$0xff]  ;;  %v2424_v55 = vld [vmem:[#allocation5] sm:$0xff]  ;;  %s3611_s3 = sld [smem:[#allocation32_spill]] }
  0x43   : > { %987 = vmatpush.bf16.msra.mxu2 %v978_v35  ;;  %v2429_v54 = vld [vmem:[#allocation7 + $0x8] sm:$0xff]  ;;  %v2428_v56 = vld [vmem:[#allocation7] sm:$0xff]  ;;  %s3616_s22 = sld [smem:[#allocation36_spill]] }
  0x44   : > { %s796_s13 = scalar_lea.vmem %s3608_s27, %s2414_s23  ;;  %940 = vmatpush.bf16.msra.mxu1 %v2422_v15  ;;  %s2415_s23 = sshll.u32 %s3165_s21, 5 }
  0x45   : > { %v823_v0 = vld [vmem:[%s3609_s24] sm:$0xf]  ;;  %v804_v2 = vld [vmem:[%s796_s13 + $0x8] sm:$0xff]  ;;  %v805_v5 = vld [vmem:[%s796_s13 + $0x10] sm:$0xff]  ;;  %1058 = vmatpush.bf16.msra.mxu3 %v2426_v51  ;;  %s3612_s27 = sld [smem:[#allocation28_spill]] }
  0x46   : > { %v803_v1 = vld [vmem:[%s796_s13] sm:$0xff]  ;;  %v843_v3 = vsel %vm841_vm0, %v823_v0, 0  ;;  %v806_v6 = vld [vmem:[%s796_s13 + $0x18] sm:$0xff]  ;;  %v808_v9 = vld [vmem:[%s796_s13 + $0x28] sm:$0xff]  ;;  %s3614_s24 = sld [smem:[#allocation35_spill]] }
  0x47   : > { %v3175_v4 = vpack.c.bf16 %v804_v2, %v803_v1  ;;  %852 = vmatpush.bf16.msra.mxu0 %v843_v3  ;;  %v3179_v7 = vpack.c.bf16 %v806_v6, %v805_v5  ;;  %v807_v8 = vld [vmem:[%s796_s13 + $0x20] sm:$0xff]  ;;  %v809_v11 = vld [vmem:[%s796_s13 + $0x30] sm:$0xff]  ;;  %v810_v12 = vld [vmem:[%s796_s13 + $0x38] sm:$0xff]  ;;  %1220 = vmatpush.bf16.msrb.mxu2 %v2431_v50 }
  0x48   : > { %v3183_v10 = vpack.c.bf16 %v808_v9, %v807_v8  ;;  %v3187_v13 = vpack.c.bf16 %v810_v12, %v809_v11  ;;  %941 = vmatpush.bf16.msra.mxu1 %v2421_v16  ;;  %v2577_v19 = vld [vmem:[%s3610_s6] ss:$0 sm:$0xff] }
  0x49   : > { %2201 = vmatmul.msk.bf16.vlgmr.msra.gmra.mxu2 %vm828_vm1, %v3175_v4  ;;  %1059 = vmatpush.bf16.msra.mxu3 %v2425_v53  ;;  %v2578_v58 = vld [vmem:[%s3611_s3] ss:$0 sm:$0xff]  ;;  %s2018_s25 = scalar_lea.hbm %s3616_s22, %s2464_s28  ;;  %s2851_s1 = scalar_lea.hbm %s3616_s22, 128 }
  0x4a   : > { %2177 = vmatmul.msk.bf16.vlgmr.msra.gmra.mxu0 %vm828_vm1, %v3175_v4 }
  0x4b   : > { %1221 = vmatpush.bf16.msrb.mxu2 %v2430_v52  ;;  %s801_s13 = scalar_lea.vmem %s3612_s27, %s2415_s23  ;;  %s3613_s27 = sld [smem:[#allocation20_spill]] }
  0x4c   : > { %942 = vmatpush.bf16.msra.mxu1 %v2420_v17  ;;  %s2021_s23 = sshll.u32 %s2018_s25, 4  ;;  %s2022_s23 = int_to_ptr.hbm [resolvable:$true] %s2021_s23 }
  0x4d   : > { %1060 = vmatpush.bf16.msra.mxu3 %v2424_v55  ;;  %s2845_s2 = sshra.s32 %s2022_s23, 4  ;;  %s2846_s2 = int_to_ptr.hbm [resolvable:$true] %s2845_s2 }
  0x4e   : > { %p2852_p3 = scmp.lt.s32.totalorder %s2846_s2, %s3616_s22 }
  0x4f   : > { %1222 = vmatpush.bf16.msrb.mxu2 %v2429_v54 }
  0x53   : > { %1223 = vmatpush.bf16.msrb.mxu2 %v2428_v56 }
  0x59   : > { %2202 = vmatmul.msk.bf16.gmra.mxu2 %vm828_vm1, %v3179_v7 }
  0x5a   : > { %2178 = vmatmul.msk.bf16.gmra.mxu0 %vm828_vm1, %v3179_v7 }
  0x69   : > { %2203 = vmatmul.msk.bf16.gmra.mxu2 %vm828_vm1, %v3183_v10 }
  0x6a   : > { %2179 = vmatmul.msk.bf16.gmra.mxu0 %vm828_vm1, %v3183_v10 }
  0x79   : > { %2204 = vmatmul.msk.bf16.gmra.mxu2 %vm828_vm1, %v3187_v13 }
  0x7a   : > { %2180 = vmatmul.msk.bf16.gmra.mxu0 %vm828_vm1, %v3187_v13 }
  0xc7   : > { %v854_v18 = vpop.f32.mrf.mxu0 }
  0xc8   : > { %v855_v20 = vadd.f32 %v2577_v19, %v854_v18 }
  0xca   : > { %v874_v23 = vmax.f32 %v855_v20, 0.0 }
  0xcf   : > { %v856_v21 = vpop.f32.mrf.mxu0 }
  0xd0   : > { %v857_v22 = vadd.f32 %v2577_v19, %v856_v21 }
  0xd2   : > { %v875_v24 = vmax.f32 %v857_v22, 0.0 }
  0xd4   : > { %v882_v25 = vpack.c.bf16 %v875_v24, %v874_v23 }
  0xd6   : > { %2197 = vmatmul.msk.bf16.vlgmr.msra.gmra.mxu1 %vm922_vm2, %v882_v25 }
  0xd7   : > { %v859_v26 = vpop.f32.mrf.mxu0 }
  0xd8   : > { %v860_v27 = vadd.f32 %v2577_v19, %v859_v26  ;;  %v3221_v26 = vpop.f32.mrf.mxu2 }
  0xda   : > { %v876_v30 = vmax.f32 %v860_v27, 0.0 }
  0xdf   : > { %v861_v28 = vpop.f32.mrf.mxu0 }
  0xe0   : > { %v862_v29 = vadd.f32 %v2577_v19, %v861_v28  ;;  %v3223_v27 = vpop.f32.mrf.mxu2 }
  0xe2   : > { %v877_v31 = vmax.f32 %v862_v29, 0.0 }
  0xe4   : > { %v883_v32 = vpack.c.bf16 %v877_v31, %v876_v30 }
  0xe6   : > { %2198 = vmatmul.msk.bf16.gmra.mxu1 %vm922_vm2, %v883_v32 }
  0xe7   : > { %v864_v34 = vpop.f32.mrf.mxu0 }
  0xe8   : > { %v865_v36 = vadd.f32 %v2577_v19, %v864_v34  ;;  %v3225_v28 = vpop.f32.mrf.mxu2 }
  0xea   : > { %v878_v39 = vmax.f32 %v865_v36, 0.0 }
  0xef   : > { %v866_v37 = vpop.f32.mrf.mxu0 }
  0xf0   : > { %v867_v38 = vadd.f32 %v2577_v19, %v866_v37  ;;  %v3227_v29 = vpop.f32.mrf.mxu2 }
  0xf2   : > { %v879_v40 = vmax.f32 %v867_v38, 0.0 }
  0xf4   : > { %v884_v41 = vpack.c.bf16 %v879_v40, %v878_v39 }
  0xf6   : > { %2199 = vmatmul.msk.bf16.gmra.mxu1 %vm922_vm2, %v884_v41 }
  0xf7   : > { %v869_v42 = vpop.f32.mrf.mxu0 }
  0xf8   : > { %v870_v43 = vadd.f32 %v2577_v19, %v869_v42  ;;  %v3229_v30 = vpop.f32.mrf.mxu2 }
  0xfa   : > { %v880_v46 = vmax.f32 %v870_v43, 0.0 }
  0xff   : > { %v871_v44 = vpop.f32.mrf.mxu0 }
 0x100   : > { %v872_v45 = vadd.f32 %v2577_v19, %v871_v44  ;;  %v3231_v31 = vpop.f32.mrf.mxu2 }
 0x102   : > { %v881_v47 = vmax.f32 %v872_v45, 0.0 }
 0x104   : > { %v885_v48 = vpack.c.bf16 %v881_v47, %v880_v46 }
 0x106   : > { %2200 = vmatmul.msk.bf16.gmra.mxu1 %vm922_vm2, %v885_v48 }
 0x108   : > { %v3233_v33 = vpop.f32.mrf.mxu2 }
 0x110   : > { %v3235_v35 = vpop.f32.mrf.mxu2 }
 0x153   : > { %v944_v57 = vpop.f32.mrf.mxu1 }
 0x154   : > { %v945_v59 = vadd.f32 %v2578_v58, %v944_v57 }
 0x156   : > { %v964_v62 = vmax.f32 %v945_v59, 0.0 }
 0x15b   : > { %v946_v60 = vpop.f32.mrf.mxu1 }
 0x15c   : > { %v947_v61 = vadd.f32 %v2578_v58, %v946_v60 }
 0x15e   : > { %v965_v63 = vmax.f32 %v947_v61, 0.0 }
 0x160   : > { %v972_v0 = vpack.c.bf16 %v965_v63, %v964_v62 }
 0x162   : > { %2221 = vmatmul.msk.bf16.vlgmr.msra.gmra.mxu3 %vm922_vm2, %v972_v0  ;;  %2261 = vmatmul.msk.bf16.vlgmr.msrb.gmra.mxu2 %vm922_vm2, %v972_v0 }
 0x163   : > { %v949_v1 = vpop.f32.mrf.mxu1 }
 0x164   : > { %v950_v2 = vadd.f32 %v2578_v58, %v949_v1 }
 0x166   : > { %v966_v6 = vmax.f32 %v950_v2, 0.0 }
 0x16b   : > { %v951_v3 = vpop.f32.mrf.mxu1 }
 0x16c   : > { %v952_v5 = vadd.f32 %v2578_v58, %v951_v3 }
 0x16e   : > { %v967_v8 = vmax.f32 %v952_v5, 0.0 }
 0x170   : > { %v973_v9 = vpack.c.bf16 %v967_v8, %v966_v6 }
 0x172   : > { %2222 = vmatmul.msk.bf16.gmra.mxu3 %vm922_vm2, %v973_v9  ;;  %2262 = vmatmul.msk.bf16.gmra.mxu2 %vm922_vm2, %v973_v9 }
 0x173   : > { %v954_v11 = vpop.f32.mrf.mxu1 }
 0x174   : > { %v955_v12 = vadd.f32 %v2578_v58, %v954_v11 }
 0x176   : > { %v968_v16 = vmax.f32 %v955_v12, 0.0 }
 0x17b   : > { %v956_v14 = vpop.f32.mrf.mxu1 }
 0x17c   : > { %v957_v15 = vadd.f32 %v2578_v58, %v956_v14 }
 0x17e   : > { %v969_v17 = vmax.f32 %v957_v15, 0.0 }
 0x180   : > { %v974_v18 = vpack.c.bf16 %v969_v17, %v968_v16 }
 0x182   : > { %2223 = vmatmul.msk.bf16.gmra.mxu3 %vm922_vm2, %v974_v18  ;;  %2263 = vmatmul.msk.bf16.gmra.mxu2 %vm922_vm2, %v974_v18 }
 0x183   : > { %v959_v19 = vpop.f32.mrf.mxu1 }
 0x184   : > { %v960_v20 = vadd.f32 %v2578_v58, %v959_v19 }
 0x186   : > { %v970_v23 = vmax.f32 %v960_v20, 0.0 }
 0x18b   : > { %v961_v21 = vpop.f32.mrf.mxu1 }
 0x18c   : > { %v962_v22 = vadd.f32 %v2578_v58, %v961_v21 }
 0x18e   : > { %v971_v24 = vmax.f32 %v962_v22, 0.0 }
 0x190   : > { %v975_v25 = vpack.c.bf16 %v971_v24, %v970_v23 }
 0x192   : > { %2224 = vmatmul.msk.bf16.gmra.mxu3 %vm922_vm2, %v975_v25  ;;  %2264 = vmatmul.msk.bf16.gmra.mxu2 %vm922_vm2, %v975_v25 }
 0x1e5   : > { %v1062_v32 = vpop.f32.mrf.mxu3  ;;  %v3237_v37 = vpop.f32.mrf.mxu2 }
 0x1e6   : > { %v1063_v49 = vadd.f32 %v1062_v32, %v3221_v26 }
 0x1ed   : > { %v1064_v34 = vpop.f32.mrf.mxu3  ;;  %v3239_v40 = vpop.f32.mrf.mxu2 }
 0x1ee   : > { %v1065_v46 = vadd.f32 %v1064_v34, %v3223_v27 }
 0x1f5   : > { %v1067_v36 = vpop.f32.mrf.mxu3  ;;  %v3241_v42 = vpop.f32.mrf.mxu2 }
 0x1f6   : > { %v1068_v51 = vadd.f32 %v1067_v36, %v3225_v28 }
 0x1fd   : > { %v1069_v38 = vpop.f32.mrf.mxu3  ;;  %v3243_v44 = vpop.f32.mrf.mxu2 }
 0x1fe   : > { %v1070_v52 = vadd.f32 %v1069_v38, %v3227_v29 }
 0x205   : > { %v1072_v39 = vpop.f32.mrf.mxu3  ;;  %v3253_v60 = vpop.f32.mrf.mxu2 }
 0x206   : > { %v1073_v47 = vadd.f32 %v1072_v39, %v3229_v30 }
 0x208   : > { %v1082_v55 = vmin.f32 %v1063_v49, %v1073_v47 }
 0x20d   : > { %v1074_v41 = vpop.f32.mrf.mxu3  ;;  %v1237_v2 = vpop.f32.mrf.mxu2 }
 0x20e   : > { %v1075_v45 = vadd.f32 %v1074_v41, %v3231_v31 }
 0x210   : > { %v1083_v53 = vmin.f32 %v1065_v46, %v1075_v45 }
 0x212   : > { %v1086_v58 = vmin.f32 %v1082_v55, %v1083_v53  ;;  %v1250_v55 = vsub.f32 %v1237_v2, %v3231_v31 }
 0x215   : > { %v1077_v43 = vpop.f32.mrf.mxu3  ;;  %v1240_v19 = vpop.f32.mrf.mxu2 }
 0x216   : > { %v1078_v48 = vadd.f32 %v1077_v43, %v3233_v33 }
 0x218   : > { %v1084_v56 = vmin.f32 %v1068_v51, %v1078_v48 }
 0x21d   : > { %v1079_v50 = vpop.f32.mrf.mxu3  ;;  %v1242_v43 = vpop.f32.mrf.mxu2 }
 0x21e   : > { %v1080_v54 = vadd.f32 %v1079_v50, %v3235_v35 }
 0x220   : > { %v1085_v57 = vmin.f32 %v1070_v52, %v1080_v54 }
 0x222   : > { %v1087_v59 = vmin.f32 %v1084_v56, %v1085_v57 }
 0x224   : > { %v1088_v61 = vmin.f32 %v1086_v58, %v1087_v59  ;;  %v3264_v58 = vld [vmem:[%s801_s13 + $0x10] sm:$0xff] }
 0x226   : > { %v1089_v62 = vrot.slane %v1088_v61, 4 }
 0x228   : > { %v1090_v63 = vmin.f32 %v1088_v61, %v1089_v62  ;;  %v3266_v62 = vld [vmem:[%s801_s13] sm:$0xff] }
 0x22a   : > { %v1091_v0 = vrot.slane %v1090_v63, 2 }
 0x22c   : > { %v1092_v1 = vmin.f32 %v1090_v63, %v1091_v0  ;;  %v1247_v63 = vsub.f32 %v3241_v42, %v3225_v28  ;;  %v1248_v0 = vsub.f32 %v3243_v44, %v3227_v29 }
 0x22e   : > { %v1093_v3 = vrot.slane %v1092_v1, 1 }
 0x230   : > { %v1094_v5 = vmin.f32 %v1092_v1, %v1093_v3  ;;  %v1245_v3 = vsub.f32 %v3237_v37, %v3221_v26  ;;  %v2439_v37 = vld [vmem:[%s3561_s12 + $0x38] sm:$0xff] }
 0x232   : > { %v1102_v6 = vsub.f32 %v1094_v5, %v1080_v54  ;;  %v1101_v8 = vsub.f32 %v1094_v5, %v1078_v48  ;;  %v1099_v9 = vsub.f32 %v1094_v5, %v1073_v47  ;;  %v1100_v11 = vsub.f32 %v1094_v5, %v1075_v45 }
 0x233   : > { %v1097_v16 = vsub.f32 %v1094_v5, %v1068_v51  ;;  %v1098_v18 = vsub.f32 %v1094_v5, %v1070_v52  ;;  %v1095_v21 = vsub.f32 %v1094_v5, %v1063_v49  ;;  %v1096_v23 = vsub.f32 %v1094_v5, %v1065_v46 }
 0x234   : > { %v1117_v12 = vmul.f32 1.442695, %v1102_v6  ;;  %v1115_v14 = vmul.f32 1.442695, %v1101_v8  ;;  %v1111_v15 = vmul.f32 1.442695, %v1099_v9  ;;  %v1251_v46 = vsub.f32 %v1240_v19, %v3233_v33 }
 0x235   : > { %v1113_v17 = vmul.f32 1.442695, %v1100_v11  ;;  %v1107_v20 = vmul.f32 1.442695, %v1097_v16  ;;  %v1109_v22 = vmul.f32 1.442695, %v1098_v18  ;;  %v1252_v48 = vsub.f32 %v1242_v43, %v3235_v35 }
 0x236   : > { %2587 = vpow2.f32 %v1117_v12  ;;  %v1103_v25 = vmul.f32 1.442695, %v1095_v21  ;;  %v1105_v34 = vmul.f32 1.442695, %v1096_v23  ;;  %v1249_v54 = vsub.f32 %v3253_v60, %v3229_v30  ;;  %v3280_v9 = vld [vmem:[%s801_s13 + $0x18] sm:$0xff]  ;;  %v3282_v11 = vld [vmem:[%s801_s13 + $0x8] sm:$0xff] }
 0x237   : > { %2589 = vpow2.f32 %v1115_v14  ;;  %v1246_v5 = vsub.f32 %v3239_v40, %v3223_v27  ;;  %v2447_v40 = vld [vmem:[#allocation8 + $0x38] sm:$0xff]  ;;  %v2438_v12 = vld [vmem:[%s3561_s12 + $0x30] sm:$0xff]  ;;  %v2437_v16 = vld [vmem:[%s3561_s12 + $0x28] sm:$0xff]  ;;  %s789_s13 = sand.u32 1, %s3613_s27  }
 0x238   : > { %2591 = vpow2.f32 %v1111_v15  ;;  %v2446_v14 = vld [vmem:[#allocation8 + $0x30] sm:$0xff]  ;;  %v2436_v19 = vld [vmem:[%s3561_s12 + $0x20] sm:$0xff]  ;;  %v2435_v23 = vld [vmem:[%s3561_s12 + $0x18] sm:$0xff]  ;;  %s2172_s21 = sshll.u32 %s789_s13, 6  ;;  %s2007_s26 = scalar_lea.sflag [#allocation4], %s789_s13 }
 0x239   : > { %2593 = vpow2.f32 %v1113_v17  ;;  %v2445_v17 = vld [vmem:[#allocation8 + $0x28] sm:$0xff]  ;;  %v1374_v21 = vld [vmem:[%s3563_s14] sm:$0xf]  ;;  %s791_s29 = scalar_lea.vmem [#allocation13], %s2172_s21  ;;  %s2847_s21 = scalar_lea.hbm %s2846_s2, 64 }
 0x23a   : > { %2595 = vpow2.f32 %v1107_v20  ;;  %v2444_v20 = vld [vmem:[#allocation8 + $0x20] sm:$0xff]  ;;  %s2019_s3 = sshll.u32 %s791_s29, 4  ;;  %p2848_p0 = scmp.ne.s32.totalorder %s2846_s2, %s2847_s21  ;;  %s2020_s3 = int_to_ptr.vmem [resolvable:$true] %s2019_s3 }
 0x23b   : > { %2597 = vpow2.f32 %v1109_v22  ;;  %v1376_v22 = vsel %vm841_vm0, %v1374_v21, 0  ;;  %v2440_v43 = vld [vmem:[#allocation8] sm:$0xff]  ;;  %p2853_p4 = scmp.lt.s32.totalorder %s2851_s1, %s2847_s21 }
 0x23c   : > { %v2588_v24 = vpop.eup %2587  ;;  %2599 = vpow2.f32 %v1103_v25  ;;  %1385 = vmatpush.bf16.msrb.mxu3 %v1376_v22  ;;  %p2849_p1 = pnand %p2848_p0, %p3074_p5 }
 0x23d   : > { %v2590_v32 = vpop.eup %2589  ;;  %2601 = vpow2.f32 %v1105_v34  ;;  %v1260_v53 = vmul.f32 %v2588_v24, %v1252_v48  ;;  %v2434_v34 = vld [vmem:[%s3561_s12 + $0x10] sm:$0xff]  ;;  %p2854_p7 = por %p2853_p4, %p2852_p3 }
 0x23e   : > { %v2592_v36 = vpop.eup %2591  ;;  %v1122_v38 = vpack.c.bf16 %v2588_v24, %v2590_v32  ;;  %v1259_v52 = vmul.f32 %v2590_v32, %v1251_v46  ;;  %v2443_v24 = vld [vmem:[#allocation8 + $0x18] sm:$0xff]  ;;  %p2850_p2 = pneg %p2849_p1 }
 0x23f   : > { %v2594_v39 = vpop.eup %2593  ;;  %v1257_v59 = vmul.f32 %v2592_v36, %v1249_v54  ;;  %2269 = vmatmul.msk.bf16.vlgmr.msrb.gmra.mxu3 %vm828_vm1, %v3175_v4  ;;  %v2432_v4 = vld [vmem:[%s3561_s12] sm:$0xff] }
 0x240   : > { %1159 = vmatpush.bf16.msrb.mxu0 %v1122_v38  ;;  %2465 = vmatpush.bf16.msrb.mxu1 %v1122_v38  ;;  %v2596_v41 = vpop.eup %2595  ;;  %v1121_v45 = vpack.c.bf16 %v2594_v39, %v2592_v36  ;;  %v1264_v57 = vpack.c.bf16 %v1260_v53, %v1259_v52  ;;  %v1258_v61 = vmul.f32 %v2594_v39, %v1250_v55  ;;  %v2442_v36 = vld [vmem:[#allocation8 + $0x10] sm:$0xff]  ;;  %v2433_v39 = vld [vmem:[%s3561_s12 + $0x8] sm:$0xff]  ;;  %v3340_v53 = vld [vmem:[%s3558_s9] ss:$0 sm:$0xff]  ;;  %p2855_p8 = pnand %p2854_p7, %p2850_p2 }
 0x241   : > { %v2598_v47 = vpop.eup %2597  ;;  %v1255_v1 = vmul.f32 %v2596_v41, %v1247_v63 }
 0x242   : > { %v2600_v49 = vpop.eup %2599  ;;  %v1120_v50 = vpack.c.bf16 %v2598_v47, %v2596_v41  ;;  %v1263_v60 = vpack.c.bf16 %v1258_v61, %v1257_v59  ;;  %v1256_v2 = vmul.f32 %v2598_v47, %v1248_v0  ;;  %v2441_v41 = vld [vmem:[#allocation8 + $0x8] sm:$0xff] }
 0x243   : > { %v2602_v51 = vpop.eup %2601  ;;  %v1253_v6 = vmul.f32 %v2600_v49, %v1245_v3 }
 0x244   : > { %1160 = vmatpush.bf16.msrb.mxu0 %v1121_v45  ;;  %2466 = vmatpush.bf16.msrb.mxu1 %v1121_v45  ;;  %v1119_v56 = vpack.c.bf16 %v2602_v51, %v2600_v49  ;;  %v1262_v42 = vpack.c.bf16 %v1256_v2, %v1255_v1  ;;  %v1254_v44 = vmul.f32 %v2602_v51, %v1246_v5 }
 0x246   : > { %v1261_v8 = vpack.c.bf16 %v1254_v44, %v1253_v6 }
 0x248   : > { %1161 = vmatpush.bf16.msrb.mxu0 %v1120_v50  ;;  %2467 = vmatpush.bf16.msrb.mxu1 %v1120_v50 }
 0x24c   : > { %1162 = vmatpush.bf16.msrb.mxu0 %v1119_v56  ;;  %2468 = vmatpush.bf16.msrb.mxu1 %v1119_v56  ;;  %v3346_v56 = vld [vmem:[%s3559_s10] ss:$0 sm:$0xff] }
 0x24f   : > { %2243 = vmatmul.msk.bf16.vlgmr.msrb.gmra.mxu1 %vm922_vm2, %v3264_v58  ;;  %2241 = vmatmul.msk.bf16.vlgmr.msrb.gmra.mxu0 %vm922_vm2, %v3266_v62 }
 0x250   : > { %1269 = vmatpush.bf16.msra.mxu1 %v1264_v57  ;;  %1471 = vmatpush.bf16.msra.mxu0 %v2439_v37 }
 0x251   : > { %2270 = vmatmul.msk.bf16.gmra.mxu3 %vm828_vm1, %v3179_v7 }
 0x254   : > { %1270 = vmatpush.bf16.msra.mxu1 %v1263_v60  ;;  %1472 = vmatpush.bf16.msra.mxu0 %v2438_v12 }
 0x258   : > { %1271 = vmatpush.bf16.msra.mxu1 %v1262_v42  ;;  %1473 = vmatpush.bf16.msra.mxu0 %v2437_v16 }
 0x25c   : > { %1272 = vmatpush.bf16.msra.mxu1 %v1261_v8  ;;  %1474 = vmatpush.bf16.msra.mxu0 %v2436_v19 }
 0x25f   : > { %2244 = vmatmul.msk.bf16.gmra.mxu1 %vm922_vm2, %v3280_v9  ;;  %2242 = vmatmul.msk.bf16.gmra.mxu0 %vm922_vm2, %v3282_v11 }
 0x260   : > { %1634 = vmatpush.bf16.msrb.mxu1 %v2447_v40  ;;  %1475 = vmatpush.bf16.msra.mxu0 %v2435_v23 }
 0x261   : > { %2271 = vmatmul.msk.bf16.gmra.mxu3 %vm828_vm1, %v3183_v10 }
 0x264   : > { %1635 = vmatpush.bf16.msrb.mxu1 %v2446_v14  ;;  %1476 = vmatpush.bf16.msra.mxu0 %v2434_v34 }
 0x268   : > { %1636 = vmatpush.bf16.msrb.mxu1 %v2445_v17  ;;  %1477 = vmatpush.bf16.msra.mxu0 %v2433_v39 }
 0x26c   : > { %1637 = vmatpush.bf16.msrb.mxu1 %v2444_v20  ;;  %1478 = vmatpush.bf16.msra.mxu0 %v2432_v4 }
 0x26f   : > { %2265 = vmatmul.msk.bf16.vlgmr.msra.gmra.mxu1 %vm922_vm2, %v3266_v62 }
 0x270   : > { %1638 = vmatpush.bf16.msrb.mxu1 %v2443_v24 }
 0x271   : > { %2272 = vmatmul.msk.bf16.gmra.mxu3 %vm828_vm1, %v3187_v13 }
 0x274   : > { %1639 = vmatpush.bf16.msrb.mxu1 %v2442_v36 }
 0x278   : > { %1640 = vmatpush.bf16.msrb.mxu1 %v2441_v41 }
 0x27c   : > { %1641 = vmatpush.bf16.msrb.mxu1 %v2440_v43 }
 0x27f   : > { %2266 = vmatmul.msk.bf16.gmra.mxu1 %vm922_vm2, %v3282_v11 }
 0x28f   : > { %2267 = vmatmul.msk.bf16.gmra.mxu1 %vm922_vm2, %v3264_v58 }
 0x29f   : > { %2268 = vmatmul.msk.bf16.gmra.mxu1 %vm922_vm2, %v3280_v9 }
 0x2cc   : > { %v3302_v15 = vpop.f32.mrf.mxu1  ;;  %v1164_v25 = vpop.f32.mrf.mxu0 }
 0x2cd   : > { %v1294_v38 = vmax.f32 %v1164_v25, 1e-30  ;;  %v1298_v12 = vmax.f32 %v3302_v15, 1e-30 }
 0x2cf   : > { %2603 = vrcp.f32 %v1294_v38 }
 0x2d4   : > { %v3307_v18 = vpop.f32.mrf.mxu1  ;;  %v1166_v45 = vpop.f32.mrf.mxu0 }
 0x2d5   : > { %v2604_v46 = vpop.eup %2603  ;;  %v1295_v48 = vmax.f32 %v1166_v45, 1e-30  ;;  %v1299_v22 = vmax.f32 %v3307_v18, 1e-30 }
 0x2d7   : > { %2605 = vrcp.f32 %v1295_v48 }
 0x2dc   : > { %v3321_v32 = vpop.f32.mrf.mxu1  ;;  %v1169_v50 = vpop.f32.mrf.mxu0 }
 0x2dd   : > { %v1296_v54 = vmax.f32 %v1169_v50, 1e-30  ;;  %v2606_v7 = vpop.eup %2605  ;;  %v1300_v18 = vmax.f32 %v3321_v32, 1e-30 }
 0x2df   : > { %2607 = vrcp.f32 %v1296_v54 }
 0x2e4   : > { %v3332_v47 = vpop.f32.mrf.mxu1  ;;  %v1171_v63 = vpop.f32.mrf.mxu0 }
 0x2e5   : > { %v2608_v1 = vpop.eup %2607  ;;  %v1297_v2 = vmax.f32 %v1171_v63, 1e-30 }
 0x2e7   : > { %2609 = vrcp.f32 %v1297_v2 }
 0x2e8   : > { %2611 = vrcp.f32 %v1298_v12 }
 0x2e9   : > { %2613 = vrcp.f32 %v1299_v22 }
 0x2ea   : > { %2615 = vrcp.f32 %v1300_v18 }
 0x2ec   : > { %v1274_v49 = vpop.f32.mrf.mxu1 }
 0x2ed   : > { %v1310_v51 = vmul.f32 %v2604_v46, %v1274_v49  ;;  %v2610_v16 = vpop.eup %2609 }
 0x2ee   : > { %v2612_v23 = vpop.eup %2611 }
 0x2ef   : > { %v1318_v52 = vadd.f32 %v1310_v51, %v3221_v26  ;;  %v3352_v26 = vld [vmem:[%s3560_s11] ss:$0 sm:$0xff]  ;;  %v2614_v4 = vpop.eup %2613 }
 0x2f0   : > { %v2616_v50 = vpop.eup %2615 }
 0x2f1   : > { %v1330_v55 = vadd.f32 %v3340_v53, %v1318_v52 }
 0x2f3   : > { %v1342_v61 = vmul.f32 %v3346_v56, %v1330_v55 }
 0x2f4   : > { %v1276_v57 = vpop.f32.mrf.mxu1 }
 0x2f5   : > { %v1311_v59 = vmul.f32 %v2606_v7, %v1276_v57  ;;  %v1354_v3 = vadd.f32 %v3352_v26, %v1342_v61 }
 0x2f7   : > { %v1319_v0 = vadd.f32 %v1311_v59, %v3223_v27  ;;  %v1362_v8 = vmax.f32 %v1354_v3, 0.0 }
 0x2f9   : > { %v1331_v60 = vadd.f32 %v3340_v53, %v1319_v0 }
 0x2fb   : > { %v1343_v5 = vmul.f32 %v3346_v56, %v1331_v60 }
 0x2fc   : > { %v1279_v42 = vpop.f32.mrf.mxu1 }
 0x2fd   : > { %v1355_v6 = vadd.f32 %v3352_v26, %v1343_v5  ;;  %v1312_v44 = vmul.f32 %v2608_v1, %v1279_v42 }
 0x2ff   : > { %v1363_v37 = vmax.f32 %v1355_v6, 0.0  ;;  %v1320_v27 = vadd.f32 %v1312_v44, %v3225_v28  ;;  %v3391_v44 = vpop.f32.mrf.mxu3 }
 0x301   : > { %v1370_v40 = vpack.c.bf16 %v1363_v37, %v1362_v8  ;;  %v1332_v14 = vadd.f32 %v3340_v53, %v1320_v27 }
 0x303   : > { %1479 = vmatmul.bf16.vlgmr.msra.gmra.mxu0 %v1370_v40  ;;  %1642 = vmatmul.bf16.vlgmr.msrb.gmra.mxu1 %v1370_v40  ;;  %v1344_v20 = vmul.f32 %v3346_v56, %v1332_v14 }
 0x304   : > { %v1281_v17 = vpop.f32.mrf.mxu1 }
 0x305   : > { %v1313_v19 = vmul.f32 %v2610_v16, %v1281_v17  ;;  %v1356_v15 = vadd.f32 %v3352_v26, %v1344_v20 }
 0x307   : > { %v1321_v10 = vadd.f32 %v1313_v19, %v3227_v29  ;;  %v1364_v36 = vmax.f32 %v1356_v15, 0.0  ;;  %v3393_v8 = vpop.f32.mrf.mxu3 }
 0x309   : > { %v1333_v21 = vadd.f32 %v3340_v53, %v1321_v10 }
 0x30b   : > { %v1345_v28 = vmul.f32 %v3346_v56, %v1333_v21 }
 0x30c   : > { %v1284_v24 = vpop.f32.mrf.mxu1 }
 0x30d   : > { %v1314_v25 = vmul.f32 %v2612_v23, %v1284_v24  ;;  %v1357_v34 = vadd.f32 %v3352_v26, %v1345_v28 }
 0x30f   : > { %v1322_v29 = vadd.f32 %v1314_v25, %v3229_v30  ;;  %v1365_v38 = vmax.f32 %v1357_v34, 0.0  ;;  %v1301_v30 = vmax.f32 %v3332_v47, 1e-30  ;;  %v3395_v37 = vpop.f32.mrf.mxu3 }
 0x311   : > { %v1371_v39 = vpack.c.bf16 %v1365_v38, %v1364_v36  ;;  %v1334_v41 = vadd.f32 %v3340_v53, %v1322_v29  ;;  %2617 = vrcp.f32 %v1301_v30 }
 0x313   : > { %1484 = vmatmul.bf16.gmra.mxu0 %v1371_v39  ;;  %1647 = vmatmul.bf16.gmra.mxu1 %v1371_v39  ;;  %v1346_v46 = vmul.f32 %v3346_v56, %v1334_v41 }
 0x314   : > { %v1286_v43 = vpop.f32.mrf.mxu1 }
 0x315   : > { %v1315_v13 = vmul.f32 %v2614_v4, %v1286_v43  ;;  %v1358_v32 = vadd.f32 %v3352_v26, %v1346_v46 }
 0x317   : > { %v1323_v45 = vadd.f32 %v1315_v13, %v3231_v31  ;;  %v1366_v7 = vmax.f32 %v1358_v32, 0.0  ;;  %v2618_v47 = vpop.eup %2617 }
 0x319   : > { %v1335_v48 = vadd.f32 %v3340_v53, %v1323_v45 }
 0x31b   : > { %v1347_v49 = vmul.f32 %v3346_v56, %v1335_v48 }
 0x31c   : > { %v1289_v51 = vpop.f32.mrf.mxu1 }
 0x31d   : > { %v1316_v52 = vmul.f32 %v2616_v50, %v1289_v51  ;;  %v1359_v54 = vadd.f32 %v3352_v26, %v1347_v49 }
 0x31f   : > { %v1324_v55 = vadd.f32 %v1316_v52, %v3233_v33  ;;  %v1367_v31 = vmax.f32 %v1359_v54, 0.0 }
 0x321   : > { %v1372_v57 = vpack.c.bf16 %v1367_v31, %v1366_v7  ;;  %v1336_v59 = vadd.f32 %v3340_v53, %v1324_v55 }
 0x323   : > { %1489 = vmatmul.bf16.gmra.mxu0 %v1372_v57  ;;  %1652 = vmatmul.bf16.gmra.mxu1 %v1372_v57  ;;  %v1348_v60 = vmul.f32 %v3346_v56, %v1336_v59 }
 0x324   : > { %v1291_v61 = vpop.f32.mrf.mxu1 }
 0x325   : > { %v1317_v63 = vmul.f32 %v2618_v47, %v1291_v61  ;;  %v1360_v33 = vadd.f32 %v3352_v26, %v1348_v60 }
 0x327   : > { %v1325_v0 = vadd.f32 %v1317_v63, %v3235_v35  ;;  %v1368_v5 = vmax.f32 %v1360_v33, 0.0 }
 0x329   : > { %v1337_v1 = vadd.f32 %v3340_v53, %v1325_v0  ;;  %v3397_v53 = vpop.f32.mrf.mxu3 }
 0x32b   : > { %v1349_v2 = vmul.f32 %v3346_v56, %v1337_v1 }
 0x32d   : > { %v1361_v3 = vadd.f32 %v3352_v26, %v1349_v2 }
 0x32f   : > { %v1369_v42 = vmax.f32 %v1361_v3, 0.0 }
 0x331   : > { %v1373_v6 = vpack.c.bf16 %v1369_v42, %v1368_v5  ;;  %v3401_v26 = vpop.f32.mrf.mxu3 }
 0x333   : > { %1494 = vmatmul.bf16.gmra.mxu0 %v1373_v6  ;;  %1657 = vmatmul.bf16.gmra.mxu1 %v1373_v6 }
 0x339   : > { %v3405_v17 = vpop.f32.mrf.mxu3 }
 0x341   : > { %v3409_v20 = vpop.f32.mrf.mxu3 }
 0x349   : > { %v3418_v34 = vpop.f32.mrf.mxu3 }
 0x380   : > { %v1480_v35 = vpop.f32.mrf.mxu0  ;;  %v3399_v40 = vpop.f32.mrf.mxu1 }
 0x381   : > { %v1481_v25 = vadd.f32 %v1480_v35, %v3391_v44 }
 0x388   : > { %v1482_v27 = vpop.f32.mrf.mxu0  ;;  %v3403_v16 = vpop.f32.mrf.mxu1 }
 0x389   : > { %v1483_v15 = vadd.f32 %v1482_v27, %v3393_v8 }
 0x390   : > { %v1485_v56 = vpop.f32.mrf.mxu0  ;;  %v3407_v10 = vpop.f32.mrf.mxu1 }
 0x391   : > { %v1486_v36 = vadd.f32 %v1485_v56, %v3395_v37 }
 0x398   : > { %v1487_v12 = vpop.f32.mrf.mxu0  ;;  %v3411_v22 = vpop.f32.mrf.mxu1 }
 0x399   : > { %v1488_v38 = vadd.f32 %v1487_v12, %v3397_v53 }
 0x3a0   : > { %v1490_v14 = vpop.f32.mrf.mxu0  ;;  %v1653_v46 = vpop.f32.mrf.mxu1 }
 0x3a1   : > { %v1491_v23 = vadd.f32 %v1490_v14, %v3401_v26 }
 0x3a3   : > { %v1500_v41 = vmin.f32 %v1481_v25, %v1491_v23 }
 0x3a8   : > { %v1492_v19 = vpop.f32.mrf.mxu0  ;;  %v1655_v51 = vpop.f32.mrf.mxu1 }
 0x3a9   : > { %v1493_v28 = vadd.f32 %v1492_v19, %v3405_v17 }
 0x3ab   : > { %v1501_v39 = vmin.f32 %v1483_v15, %v1493_v28 }
 0x3ad   : > { %v1504_v13 = vmin.f32 %v1500_v41, %v1501_v39  ;;  %v1668_v41 = vsub.f32 %v1655_v51, %v3405_v17  ;;  %v1664_v51 = vsub.f32 %v3403_v16, %v3393_v8  ;;  %v2454_v16 = vld [vmem:[#allocation10 + $0x30] sm:$0xff] }
 0x3b0   : > { %v1495_v21 = vpop.f32.mrf.mxu0  ;;  %v1658_v1 = vpop.f32.mrf.mxu1 }
 0x3b1   : > { %v1496_v24 = vadd.f32 %v1495_v21, %v3409_v20 }
 0x3b3   : > { %v1502_v4 = vmin.f32 %v1486_v36, %v1496_v24 }
 0x3b8   : > { %v1497_v29 = vpop.f32.mrf.mxu0  ;;  %v1660_v21 = vpop.f32.mrf.mxu1 }
 0x3b9   : > { %v1498_v18 = vadd.f32 %v1497_v29, %v3418_v34 }
 0x3bb   : > { %v1503_v43 = vmin.f32 %v1488_v38, %v1498_v18 }
 0x3bd   : > { %v1505_v45 = vmin.f32 %v1502_v4, %v1503_v43 }
 0x3bf   : > { %v1506_v48 = vmin.f32 %v1504_v13, %v1505_v45 }
 0x3c1   : > { %v1507_v30 = vrot.slane %v1506_v48, 4 }
 0x3c3   : > { %v1508_v49 = vmin.f32 %v1506_v48, %v1507_v30  ;;  %v1665_v48 = vsub.f32 %v3407_v10, %v3395_v37  ;;  %v1666_v30 = vsub.f32 %v3411_v22, %v3397_v53 }
 0x3c5   : > { %v1509_v32 = vrot.slane %v1508_v49, 2 }
 0x3c7   : > { %v1510_v50 = vmin.f32 %v1508_v49, %v1509_v32 }
 0x3c9   : > { %v1511_v52 = vrot.slane %v1510_v50, 1 }
 0x3cb   : > { %v1512_v54 = vmin.f32 %v1510_v50, %v1511_v52  ;;  %v1663_v50 = vsub.f32 %v3399_v40, %v3391_v44  ;;  %v2455_v40 = vld [vmem:[#allocation10 + $0x38] sm:$0xff] }
 0x3cc   : > { %1860 = vmatpush.bf16.msrb.mxu0 %v2455_v40 }
 0x3cd   : > { %v1520_v55 = vsub.f32 %v1512_v54, %v1498_v18  ;;  %v1519_v7 = vsub.f32 %v1512_v54, %v1496_v24  ;;  %v1517_v31 = vsub.f32 %v1512_v54, %v1491_v23  ;;  %v1518_v57 = vsub.f32 %v1512_v54, %v1493_v28 }
 0x3ce   : > { %v1515_v63 = vsub.f32 %v1512_v54, %v1486_v36  ;;  %v1516_v60 = vsub.f32 %v1512_v54, %v1488_v38  ;;  %v1513_v33 = vsub.f32 %v1512_v54, %v1481_v25  ;;  %v1514_v5 = vsub.f32 %v1512_v54, %v1483_v15 }
 0x3cf   : > { %v1535_v59 = vmul.f32 1.442695, %v1520_v55  ;;  %v1533_v47 = vmul.f32 1.442695, %v1519_v7  ;;  %v1529_v61 = vmul.f32 1.442695, %v1517_v31  ;;  %v1669_v15 = vsub.f32 %v1658_v1, %v3409_v20 }
 0x3d0   : > { %v1531_v0 = vmul.f32 1.442695, %v1518_v57  ;;  %v1525_v2 = vmul.f32 1.442695, %v1515_v63  ;;  %v1527_v3 = vmul.f32 1.442695, %v1516_v60  ;;  %v1670_v24 = vsub.f32 %v1660_v21, %v3418_v34  ;;  %1861 = vmatpush.bf16.msrb.mxu0 %v2454_v16 }
 0x3d1   : > { %2619 = vpow2.f32 %v1535_v59  ;;  %v1521_v6 = vmul.f32 1.442695, %v1513_v33  ;;  %v1523_v27 = vmul.f32 1.442695, %v1514_v5  ;;  %v1667_v18 = vsub.f32 %v1653_v46, %v3401_v26  ;;  %v2453_v7 = vld [vmem:[#allocation10 + $0x28] sm:$0xff]  ;;  %v2452_v57 = vld [vmem:[#allocation10 + $0x20] sm:$0xff] }
 0x3d2   : > { %2621 = vpow2.f32 %v1533_v47 }
 0x3d3   : > { %2623 = vpow2.f32 %v1529_v61  ;;  %v2448_v61 = vld [vmem:[#allocation10] sm:$0xff] }
 0x3d4   : > { %2625 = vpow2.f32 %v1531_v0  ;;  %1862 = vmatpush.bf16.msrb.mxu0 %v2453_v7 }
 0x3d5   : > { %2627 = vpow2.f32 %v1525_v2 }
 0x3d6   : > { %2629 = vpow2.f32 %v1527_v3 }
 0x3d7   : > { %v2620_v42 = vpop.eup %2619  ;;  %2631 = vpow2.f32 %v1521_v6 }
 0x3d8   : > { %v2622_v35 = vpop.eup %2621  ;;  %2633 = vpow2.f32 %v1523_v27  ;;  %v1678_v39 = vmul.f32 %v2620_v42, %v1670_v24  ;;  %1863 = vmatpush.bf16.msrb.mxu0 %v2452_v57  ;;  %v3467_v27 = vld [vmem:[%s3565_s16] ss:$0 sm:$0xff] }
 0x3d9   : > { %v2624_v56 = vpop.eup %2623  ;;  %v1540_v12 = vpack.c.bf16 %v2620_v42, %v2622_v35  ;;  %v1677_v38 = vmul.f32 %v2622_v35, %v1669_v15  ;;  %v3461_v42 = vld [vmem:[%s3564_s15] ss:$0 sm:$0xff] }
 0x3da   : > { %v2626_v14 = vpop.eup %2625  ;;  %v1675_v13 = vmul.f32 %v2624_v56, %v1667_v18 }
 0x3db   : > { %1545 = vmatpush.bf16.msra.mxu2 %v1540_v12  ;;  %2469 = vmatpush.bf16.msra.mxu3 %v1540_v12  ;;  %v2628_v19 = vpop.eup %2627  ;;  %v1539_v28 = vpack.c.bf16 %v2626_v14, %v2624_v56  ;;  %v1682_v43 = vpack.c.bf16 %v1678_v39, %v1677_v38  ;;  %v1676_v45 = vmul.f32 %v2626_v14, %v1668_v41 }
 0x3dc   : > { %v2630_v23 = vpop.eup %2629  ;;  %v1673_v46 = vmul.f32 %v2628_v19, %v1665_v48 }
 0x3dd   : > { %v2632_v25 = vpop.eup %2631  ;;  %v1538_v29 = vpack.c.bf16 %v2630_v23, %v2628_v19  ;;  %v1681_v49 = vpack.c.bf16 %v1676_v45, %v1675_v13  ;;  %v1674_v32 = vmul.f32 %v2630_v23, %v1666_v30 }
 0x3de   : > { %v2634_v36 = vpop.eup %2633  ;;  %v1671_v52 = vmul.f32 %v2632_v25, %v1663_v50 }
 0x3df   : > { %1546 = vmatpush.bf16.msra.mxu2 %v1539_v28  ;;  %2470 = vmatpush.bf16.msra.mxu3 %v1539_v28  ;;  %v1537_v4 = vpack.c.bf16 %v2634_v36, %v2632_v25  ;;  %v1680_v10 = vpack.c.bf16 %v1674_v32, %v1673_v46  ;;  %v1672_v22 = vmul.f32 %v2634_v36, %v1664_v51 }
 0x3e1   : > { %v1679_v54 = vpack.c.bf16 %v1672_v22, %v1671_v52 }
 0x3e3   : > { %1547 = vmatpush.bf16.msra.mxu2 %v1538_v29  ;;  %2471 = vmatpush.bf16.msra.mxu3 %v1538_v29 }
 0x3e7   : > { %1548 = vmatpush.bf16.msra.mxu2 %v1537_v4  ;;  %2472 = vmatpush.bf16.msra.mxu3 %v1537_v4 }
 0x3ea   : > { %2307 = vmatmul.msk.bf16.vlgmr.msra.gmra.mxu3 %vm922_vm2, %v3264_v58  ;;  %2305 = vmatmul.msk.bf16.vlgmr.msra.gmra.mxu2 %vm922_vm2, %v3266_v62 }
 0x3eb   : > { %1687 = vmatpush.bf16.msrb.mxu3 %v1682_v43 }
 0x3ef   : > { %1688 = vmatpush.bf16.msrb.mxu3 %v1681_v49 }
 0x3f3   : > { %1689 = vmatpush.bf16.msrb.mxu3 %v1680_v10 }
 0x3f7   : > { %1690 = vmatpush.bf16.msrb.mxu3 %v1679_v54 }
 0x3fa   : > { %2308 = vmatmul.msk.bf16.gmra.mxu3 %vm922_vm2, %v3280_v9  ;;  %2306 = vmatmul.msk.bf16.gmra.mxu2 %vm922_vm2, %v3282_v11 }
 0x40a   : > { %2341 = vmatmul.msk.bf16.vlgmr.msrb.gmra.mxu3 %vm922_vm2, %v3266_v62  ;;  %v2451_v62 = vld [vmem:[#allocation10 + $0x18] sm:$0xff] }
 0x40b   : > { %1864 = vmatpush.bf16.msrb.mxu0 %v2451_v62 }
 0x41a   : > { %2342 = vmatmul.msk.bf16.gmra.mxu3 %vm922_vm2, %v3282_v11 }
 0x42a   : > { %2343 = vmatmul.msk.bf16.gmra.mxu3 %vm922_vm2, %v3264_v58  ;;  %v2450_v58 = vld [vmem:[#allocation10 + $0x10] sm:$0xff] }
 0x42b   : > { %1865 = vmatpush.bf16.msrb.mxu0 %v2450_v58 }
 0x43a   : > { %2344 = vmatmul.msk.bf16.gmra.mxu3 %vm922_vm2, %v3280_v9  ;;  %v2449_v9 = vld [vmem:[#allocation10 + $0x8] sm:$0xff] }
 0x43b   : > { %1866 = vmatpush.bf16.msrb.mxu0 %v2449_v9 }
 0x43f   : > { %1867 = vmatpush.bf16.msrb.mxu0 %v2448_v61 }
 0x46d   : > { %v1560_v55 = vpop.f32.mrf.mxu3  ;;  %v1550_v59 = vpop.f32.mrf.mxu2 }
 0x46e   : > { %v1712_v47 = vmax.f32 %v1550_v59, 1e-30 }
 0x470   : > { %2635 = vrcp.f32 %v1712_v47  ;;  %v2462_v47 = vld [vmem:[#allocation11 + $0x30] sm:$0xff] }
 0x475   : > { %v3451_v31 = vpop.f32.mrf.mxu3  ;;  %v1552_v63 = vpop.f32.mrf.mxu2 }
 0x476   : > { %v2636_v60 = vpop.eup %2635  ;;  %v1713_v1 = vmax.f32 %v1552_v63, 1e-30  ;;  %v1717_v50 = vmax.f32 %v3451_v31, 1e-30  ;;  %v2463_v31 = vld [vmem:[#allocation11 + $0x38] sm:$0xff]  ;;  %v2461_v63 = vld [vmem:[#allocation11 + $0x28] sm:$0xff] }
 0x477   : > { %1969 = vmatpush.bf16.msrb.mxu2 %v2463_v31 }
 0x478   : > { %2637 = vrcp.f32 %v1713_v1 }
 0x47b   : > { %1970 = vmatpush.bf16.msrb.mxu2 %v2462_v47 }
 0x47d   : > { %v3453_v11 = vpop.f32.mrf.mxu3  ;;  %v1555_v3 = vpop.f32.mrf.mxu2 }
 0x47e   : > { %v1714_v6 = vmax.f32 %v1555_v3, 1e-30  ;;  %v2638_v56 = vpop.eup %2637  ;;  %v1718_v7 = vmax.f32 %v3453_v11, 1e-30 }
 0x47f   : > { %1971 = vmatpush.bf16.msrb.mxu2 %v2461_v63 }
 0x480   : > { %2639 = vrcp.f32 %v1714_v6  ;;  %v2460_v6 = vld [vmem:[#allocation11 + $0x20] sm:$0xff] }
 0x483   : > { %1972 = vmatpush.bf16.msrb.mxu2 %v2460_v6 }
 0x485   : > { %v3455_v0 = vpop.f32.mrf.mxu3  ;;  %v1557_v28 = vpop.f32.mrf.mxu2 }
 0x486   : > { %v2640_v15 = vpop.eup %2639  ;;  %v1715_v24 = vmax.f32 %v1557_v28, 1e-30  ;;  %v1719_v11 = vmax.f32 %v3455_v0, 1e-30 }
 0x488   : > { %2641 = vrcp.f32 %v1715_v24 }
 0x48d   : > { %v1692_v2 = vpop.f32.mrf.mxu3 }
 0x48e   : > { %v1728_v33 = vmul.f32 %v2636_v60, %v1692_v2  ;;  %v2642_v45 = vpop.eup %2641 }
 0x490   : > { %v1736_v5 = vadd.f32 %v1728_v33, %v3391_v44  ;;  %v3473_v44 = vld [vmem:[%s3566_s17] ss:$0 sm:$0xff] }
 0x492   : > { %v1748_v35 = vadd.f32 %v3461_v42, %v1736_v5 }
 0x494   : > { %v1760_v19 = vmul.f32 %v3467_v27, %v1748_v35 }
 0x495   : > { %v1694_v12 = vpop.f32.mrf.mxu3 }
 0x496   : > { %v1729_v14 = vmul.f32 %v2638_v56, %v1694_v12  ;;  %v1772_v25 = vadd.f32 %v3473_v44, %v1760_v19 }
 0x498   : > { %v1737_v21 = vadd.f32 %v1729_v14, %v3393_v8  ;;  %v1780_v18 = vmax.f32 %v1772_v25, 0.0  ;;  %v1716_v8 = vmax.f32 %v1560_v55, 1e-30 }
 0x49a   : > { %v1749_v23 = vadd.f32 %v3461_v42, %v1737_v21  ;;  %2643 = vrcp.f32 %v1716_v8 }
 0x49b   : > { %2645 = vrcp.f32 %v1717_v50 }
 0x49c   : > { %v1761_v29 = vmul.f32 %v3467_v27, %v1749_v23  ;;  %2647 = vrcp.f32 %v1718_v7 }
 0x49d   : > { %v1697_v36 = vpop.f32.mrf.mxu3  ;;  %2649 = vrcp.f32 %v1719_v11 }
 0x49e   : > { %v1773_v38 = vadd.f32 %v3473_v44, %v1761_v29  ;;  %v1730_v39 = vmul.f32 %v2640_v15, %v1697_v36 }
 0x4a0   : > { %v1781_v41 = vmax.f32 %v1773_v38, 0.0  ;;  %v1738_v4 = vadd.f32 %v1730_v39, %v3395_v37  ;;  %v2644_v10 = vpop.eup %2643  ;;  %v2459_v39 = vld [vmem:[#allocation11 + $0x18] sm:$0xff] }
 0x4a1   : > { %v2646_v62 = vpop.eup %2645  ;;  %1973 = vmatpush.bf16.msrb.mxu2 %v2459_v39 }
 0x4a2   : > { %v1788_v43 = vpack.c.bf16 %v1781_v41, %v1780_v18  ;;  %v1750_v13 = vadd.f32 %v3461_v42, %v1738_v4  ;;  %v2648_v2 = vpop.eup %2647  ;;  %v2458_v18 = vld [vmem:[#allocation11 + $0x10] sm:$0xff]  ;;  %v2457_v41 = vld [vmem:[#allocation11 + $0x8] sm:$0xff]  ;;  %v2456_v4 = vld [vmem:[#allocation11] sm:$0xff] }
 0x4a3   : > { %v2650_v14 = vpop.eup %2649 }
 0x4a4   : > { %1868 = vmatmul.bf16.vlgmr.msrb.gmra.mxu0 %v1788_v43  ;;  %v1762_v46 = vmul.f32 %v3467_v27, %v1750_v13 }
 0x4a5   : > { %v1699_v48 = vpop.f32.mrf.mxu3  ;;  %1974 = vmatpush.bf16.msrb.mxu2 %v2458_v18 }
 0x4a6   : > { %v1731_v30 = vmul.f32 %v2642_v45, %v1699_v48  ;;  %v1774_v37 = vadd.f32 %v3473_v44, %v1762_v46 }
 0x4a8   : > { %v1739_v49 = vadd.f32 %v1731_v30, %v3397_v53  ;;  %v1782_v16 = vmax.f32 %v1774_v37, 0.0 }
 0x4a9   : > { %1975 = vmatpush.bf16.msrb.mxu2 %v2457_v41 }
 0x4aa   : > { %v1751_v32 = vadd.f32 %v3461_v42, %v1739_v49 }
 0x4ac   : > { %v1763_v51 = vmul.f32 %v3467_v27, %v1751_v32 }
 0x4ad   : > { %v1702_v52 = vpop.f32.mrf.mxu3  ;;  %1976 = vmatpush.bf16.msrb.mxu2 %v2456_v4 }
 0x4ae   : > { %v1732_v22 = vmul.f32 %v2644_v10, %v1702_v52  ;;  %v1775_v54 = vadd.f32 %v3473_v44, %v1763_v51 }
 0x4b0   : > { %v1740_v40 = vadd.f32 %v1732_v22, %v3401_v26  ;;  %v1783_v53 = vmax.f32 %v1775_v54, 0.0 }
 0x4b2   : > { %v1789_v55 = vpack.c.bf16 %v1783_v53, %v1782_v16  ;;  %v1752_v57 = vadd.f32 %v3461_v42, %v1740_v40 }
 0x4b4   : > { %1873 = vmatmul.bf16.gmra.mxu0 %v1789_v55  ;;  %v1764_v9 = vmul.f32 %v3467_v27, %v1752_v57 }
 0x4b5   : > { %v1704_v59 = vpop.f32.mrf.mxu3 }
 0x4b6   : > { %v1733_v58 = vmul.f32 %v2646_v62, %v1704_v59  ;;  %v1776_v1 = vadd.f32 %v3473_v44, %v1764_v9 }
 0x4b8   : > { %v1741_v61 = vadd.f32 %v1733_v58, %v3405_v17  ;;  %v1784_v35 = vmax.f32 %v1776_v1, 0.0  ;;  %v2586_v58 = vld [vmem:[%s3614_s24] ss:$0 sm:$0xff] }
 0x4ba   : > { %v1753_v26 = vadd.f32 %v3461_v42, %v1741_v61 }
 0x4bc   : > { %v1765_v60 = vmul.f32 %v3467_v27, %v1753_v26 }
 0x4bd   : > { %v1707_v33 = vpop.f32.mrf.mxu3 }
 0x4be   : > { %v1734_v3 = vmul.f32 %v2648_v2, %v1707_v33  ;;  %v1777_v5 = vadd.f32 %v3473_v44, %v1765_v60 }
 0x4c0   : > { %v1742_v17 = vadd.f32 %v1734_v3, %v3409_v20  ;;  %v1785_v56 = vmax.f32 %v1777_v5, 0.0 }
 0x4c2   : > { %v1790_v12 = vpack.c.bf16 %v1785_v56, %v1784_v35  ;;  %v1754_v0 = vadd.f32 %v3461_v42, %v1742_v17 }
 0x4c4   : > { %1878 = vmatmul.bf16.gmra.mxu0 %v1790_v12  ;;  %v1766_v28 = vmul.f32 %v3467_v27, %v1754_v0 }
 0x4c5   : > { %v1709_v19 = vpop.f32.mrf.mxu3 }
 0x4c6   : > { %v1735_v21 = vmul.f32 %v2650_v14, %v1709_v19  ;;  %v1778_v20 = vadd.f32 %v3473_v44, %v1766_v28 }
 0x4c8   : > { %v1743_v23 = vadd.f32 %v1735_v21, %v3418_v34  ;;  %v1786_v29 = vmax.f32 %v1778_v20, 0.0 }
 0x4ca   : > { %v1755_v15 = vadd.f32 %v3461_v42, %v1743_v23  ;;  %v2585_v42 = vld [vmem:[%s3568_s19] ss:$0 sm:$0xff] }
 0x4cc   : > { %v1767_v24 = vmul.f32 %v3467_v27, %v1755_v15 }
 0x4ce   : > { %v1779_v25 = vadd.f32 %v3473_v44, %v1767_v24 }
 0x4d0   : > { %v1787_v36 = vmax.f32 %v1779_v25, 0.0 }
 0x4d2   : > { %v1791_v38 = vpack.c.bf16 %v1787_v36, %v1786_v29 }
 0x4d4   : > { %1883 = vmatmul.bf16.gmra.mxu0 %v1791_v38 }
 0x521   : > { %v1869_v34 = vpop.f32.mrf.mxu0 }
 0x522   : > { %v1870_v27 = vadd.f32 %v2585_v42, %v1869_v34 }
 0x524   : > { %v1889_v8 = vmax.f32 %v1870_v27, 0.0 }
 0x529   : > { %v1871_v43 = vpop.f32.mrf.mxu0 }
 0x52a   : > { %v1872_v44 = vadd.f32 %v2585_v42, %v1871_v43 }
 0x52c   : > { %v1890_v13 = vmax.f32 %v1872_v44, 0.0 }
 0x52e   : > { %v1897_v45 = vpack.c.bf16 %v1890_v13, %v1889_v8 }
 0x530   : > { %1977 = vmatmul.bf16.vlgmr.msrb.gmra.mxu2 %v1897_v45 }
 0x531   : > { %v1874_v48 = vpop.f32.mrf.mxu0 }
 0x532   : > { %v1875_v30 = vadd.f32 %v2585_v42, %v1874_v48 }
 0x534   : > { %v1891_v32 = vmax.f32 %v1875_v30, 0.0 }
 0x539   : > { %v1876_v49 = vpop.f32.mrf.mxu0 }
 0x53a   : > { %v1877_v46 = vadd.f32 %v2585_v42, %v1876_v49 }
 0x53c   : > { %v1892_v50 = vmax.f32 %v1877_v46, 0.0 }
 0x53e   : > { %v1898_v51 = vpack.c.bf16 %v1892_v50, %v1891_v32 }
 0x540   : > { %1982 = vmatmul.bf16.gmra.mxu2 %v1898_v51 }
 0x541   : > { %v1879_v37 = vpop.f32.mrf.mxu0 }
 0x542   : > { %v1880_v10 = vadd.f32 %v2585_v42, %v1879_v37 }
 0x544   : > { %v1893_v54 = vmax.f32 %v1880_v10, 0.0 }
 0x549   : > { %v1881_v52 = vpop.f32.mrf.mxu0 }
 0x54a   : > { %v1882_v22 = vadd.f32 %v2585_v42, %v1881_v52 }
 0x54c   : > { %v1894_v40 = vmax.f32 %v1882_v22, 0.0 }
 0x54e   : > { %v1899_v16 = vpack.c.bf16 %v1894_v40, %v1893_v54 }
 0x550   : > { %1987 = vmatmul.bf16.gmra.mxu2 %v1899_v16 }
 0x551   : > { %v1884_v53 = vpop.f32.mrf.mxu0 }
 0x552   : > { %v1885_v55 = vadd.f32 %v2585_v42, %v1884_v53 }
 0x554   : > { %v1895_v31 = vmax.f32 %v1885_v55, 0.0 }
 0x559   : > { %v1886_v7 = vpop.f32.mrf.mxu0 }
 0x55a   : > { %v1887_v57 = vadd.f32 %v2585_v42, %v1886_v7 }
 0x55c   : > { %v1896_v62 = vmax.f32 %v1887_v57, 0.0 }
 0x55e   : > { %v1900_v59 = vpack.c.bf16 %v1896_v62, %v1895_v31 }
 0x560   : > { %1992 = vmatmul.bf16.gmra.mxu2 %v1900_v59 }
 0x5b3   : > { %v1978_v47 = vpop.f32.mrf.mxu2 }
 0x5b4   : > { %v1979_v9 = vadd.f32 %v2586_v58, %v1978_v47 }
 0x5b6   : > { %1998 = vst [vmem:[%s791_s29] sm:$0xff] %v1979_v9 }
 0x5bb   : > { %v1980_v61 = vpop.f32.mrf.mxu2 }
 0x5bc   : > { %v1981_v26 = vadd.f32 %v2586_v58, %v1980_v61 }
 0x5be   : > { %1999 = vst [vmem:[%s791_s29 + $0x8] sm:$0xff] %v1981_v26 }
 0x5c3   : > { %v1983_v63 = vpop.f32.mrf.mxu2 }
 0x5c4   : > { %v1984_v11 = vadd.f32 %v2586_v58, %v1983_v63 }
 0x5c6   : > { %2000 = vst [vmem:[%s791_s29 + $0x10] sm:$0xff] %v1984_v11 }
 0x5cb   : > { %v1985_v60 = vpop.f32.mrf.mxu2 }
 0x5cc   : > { %v1986_v1 = vadd.f32 %v2586_v58, %v1985_v60 }
 0x5ce   : > { %2001 = vst [vmem:[%s791_s29 + $0x18] sm:$0xff] %v1986_v1 }
 0x5d3   : > { %v1988_v2 = vpop.f32.mrf.mxu2 }
 0x5d4   : > { %v1989_v33 = vadd.f32 %v2586_v58, %v1988_v2 }
 0x5d6   : > { %2002 = vst [vmem:[%s791_s29 + $0x20] sm:$0xff] %v1989_v33 }
 0x5db   : > { %v1990_v3 = vpop.f32.mrf.mxu2 }
 0x5dc   : > { %v1991_v5 = vadd.f32 %v2586_v58, %v1990_v3 }
 0x5de   : > { %2003 = vst [vmem:[%s791_s29 + $0x28] sm:$0xff] %v1991_v5 }
 0x5e3   : > { %v1993_v6 = vpop.f32.mrf.mxu2 }
 0x5e4   : > { %v1994_v17 = vadd.f32 %v2586_v58, %v1993_v6 }
 0x5e6   : > { %2004 = vst [vmem:[%s791_s29 + $0x30] sm:$0xff] %v1994_v17 }
 0x5eb   : > { %v1995_v35 = vpop.f32.mrf.mxu2 }
 0x5ec   : > { %v1996_v56 = vadd.f32 %v2586_v58, %v1995_v35 }
 0x5ee   : > { %2005 = vst [vmem:[%s791_s29 + $0x38] sm:$0xff] %v1996_v56 }
 0x5ef   : > { %2858 = shalt.err (!%p2855_p8)
}
 0x5f0   : > { %s2919_s27 = smov 128   ;;  %s2920_s13 = smov 8  }
 0x5f1   : > { %2497 = dma.vmem_to_hbm [thread:$0]  (%p3074_p5), %s2020_s3, 1024, %s2022_s23, %s2007_s26, %s2919_s27, %s2919_s27, %s2920_s13  }
 0x5f2 PF: > { %s3617_s29 = sld [smem:[#allocation22_spill]] }
 0x5f3   : > { %s3618_s0 = sld [smem:[#allocation19_spill]] }
 0x5f8   : > { %p2534_p9 = scmp.ge.s32.totalorder %s3617_s29, 2 }
 0x5f9   : > { %s2036_s25 = sand.u32 1, %s3618_s0  }
 0x5fa   : > { %p2519_p10 = pnand %p2534_p9, %p3078_p6  ;;  %s2037_s4 = scalar_lea.sflag [#allocation4], %s2036_s25 }
 0x5fc   : > { %p2520_p11 = pneg %p2519_p10 }
 0x5fe   : > { %2892 = dma.done.wait (%p2520_p11), %s2037_s4, 1024  }
 0x5ff   : > { %2894 = vsyncadd (%p2520_p11), %s2037_s4, 4294966272  ;;  %s3620_s30 = sld [smem:[#allocation23_spill]] }
 0x600   : > { %s3621_s3 = sld [smem:[#allocation20_spill]] }
 0x601   : > { %s3622_s28 = sld [smem:[#allocation21_spill]] }
 0x602   : > { %s3623_s29 = sld [smem:[#allocation24_spill]] }
 0x605   : > { %p36_p12 = scmp.ge.s32.totalorder %s3620_s30, 4  }
 0x607   :  { %38 = sbr.rel (!%p36_p12) target bundleno = 18 (0x12), region = 171 }
 0x60c   :  { %2043 = vsyncpa [#allocation3], 1 }
 0x60d   :  { %2045 = vsyncpa [#allocation3 + $0x1], 1 }
 0x60e   :  { %2046 = vsyncpa [#allocation6], 1 }
 0x60f   :  { %2047 = vsyncpa [#allocation9], 1 }
 0x610   :  { %2048 = vsyncpa [#allocation12], 1 }
 0x611   :  { %2049 = vsyncpa [#allocation4], 1 }
 0x612   :  { %2051 = vsyncpa [#allocation4 + $0x1], 1 }

</bundles_post_ra>
